<compile_context>
chip_gen: v7x
topology: tpu7x:2x2x1
jax: 0.10.0
libtpu: 0.0.40
codegen_flags: <defaults>
</compile_context>

<pallas_src>
import functools

import jax
import jax.numpy as jnp
from jax import lax
from jax.experimental import pallas as pl
from jax.experimental.pallas import tpu as pltpu

EPS = 1e-5          # torch.nn.LayerNorm default
NEG_INF = -1e30     # finite "masked" value (safe under exp)


def _ln(v, g, b):
    # v: (..., D) f32 ; g, b: (1, D) f32
    mu = jnp.mean(v, axis=-1, keepdims=True)
    var = jnp.mean((v - mu) ** 2, axis=-1, keepdims=True)
    return (v - mu) * lax.rsqrt(var + EPS) * g + b


def _largest_divisor_leq(n, cap):
    cap = max(1, min(n, cap))
    for c in range(cap, 0, -1):
        if n % c == 0:
            return c
    return 1


def _vmem_limit_bytes():
    # ~85% of physical VMEM, leaving headroom for Mosaic internal scratch.
    try:
        cap = int(pltpu.get_tpu_info().vmem_capacity_bytes)
        return max(32 * 1024 * 1024, int(cap * 0.85))
    except Exception:
        return 64 * 1024 * 1024


def _gelu_dtype():
    # QuickGELU in bf16 only where VPU/EUP are bf16-native (v6e / v7x); f32 on v5e-.
    try:
        kind = jax.devices()[0].device_kind.lower()
    except Exception:
        return jnp.float32
    if any(t in kind for t in ("v2", "v3", "v4", "v5")):
        return jnp.float32
    return jnp.bfloat16


# ---------------------------------------------------------------------------
# Fused transformer kernel: one grid step == one residual attention block for
# one batch chunk.  Residual stream (RW, D) f32 lives in the output block.
# ---------------------------------------------------------------------------
def transformer_kernel(x0_ref, slab_ref, wqkv_ref, wout_ref, wfc_ref, wproj_ref,
                       o_ref, *, num_heads, seq_len, mlp_chunk_rows, gelu_dtype):
    layer = pl.program_id(1)
    RW, D = o_ref.shape                  # RW = batch_chunk * seq_len (mult. of 8)
    Lp = seq_len
    Bc = RW // Lp
    H = num_heads
    Dh = D // H
    scale = 1.0 / float(Dh) ** 0.5

    # Seed the VMEM-resident residual stream with x0 = prompts + positional_emb
    # (precomputed in XLA).  Same output block for every layer -> stays resident.
    @pl.when(layer == 0)
    def _():
        o_ref[...] = x0_ref[...]

    x = o_ref[...]                       # (RW, D) f32

    # Small per-layer params packed as [ln1_g, ln1_b, ln2_g, ln2_b, bout, bproj,
    # bqkv(3D), bfc(4D)] along the last axis of one slab.
    def cut(off, width):
        return slab_ref[0, :, off:off + width]        # (1, width) f32

    ln1_g = cut(0, D)
    ln1_b = cut(D, D)
    ln2_g = cut(2 * D, D)
    ln2_b = cut(3 * D, D)
    bout = cut(4 * D, D)
    bproj = cut(5 * D, D)
    bqkv = cut(6 * D, 3 * D)
    bfc = cut(9 * D, 4 * D)

    wqkv = wqkv_ref[0]                   # (D, 3D) bf16, (in, out) layout

    # ---------------- multi-head causal self-attention (pre-LN) ----------------
    y = _ln(x, ln1_g, ln1_b).astype(wqkv.dtype)
    qkv = (jnp.dot(y, wqkv, preferred_element_type=jnp.float32) + bqkv
           ).astype(wqkv.dtype)          # (RW, 3D) bf16 (halves VMEM vs f32)

    rows_i = lax.broadcasted_iota(jnp.int32, (Lp, Lp), 0)
    cols_i = lax.broadcasted_iota(jnp.int32, (Lp, Lp), 1)
    causal = rows_i >= cols_i            # padded key cols masked for real queries

    # Head outputs folded directly into the output projection:
    #   attn = sum_h softmax(q_h k_h^T) v_h @ Wout[h*Dh:(h+1)*Dh, :]
    # -> no concatenate / lane relayout, no list of live per-head tensors.
    attn = None
    for h in range(H):
        qh = qkv[:, h * Dh:(h + 1) * Dh].reshape(Bc, Lp, Dh)
        kh = qkv[:, D + h * Dh:D + (h + 1) * Dh].reshape(Bc, Lp, Dh)
        vh = qkv[:, 2 * D + h * Dh:2 * D + (h + 1) * Dh].reshape(Bc, Lp, Dh)

        s = jnp.einsum('bqd,bkd->bqk', qh, kh,
                       preferred_element_type=jnp.float32)        # (Bc, Lp, Lp) f32
        s = jnp.where(causal, s * scale, NEG_INF)
        s = s - jnp.max(s, axis=-1, keepdims=True)
        p = jnp.exp(s)
        denom = jnp.sum(p, axis=-1, keepdims=True)
        hd = jnp.einsum('bqk,bkd->bqd', p.astype(qkv.dtype), vh,
                        preferred_element_type=jnp.float32)       # (Bc, Lp, Dh) f32
        hd = (hd / denom).reshape(RW, Dh).astype(wqkv.dtype)      # exact normalization
        contrib = jnp.dot(hd, wout_ref[0, h * Dh:(h + 1) * Dh, :],
                          preferred_element_type=jnp.float32)     # (RW, D) f32
        attn = contrib if attn is None else attn + contrib

    x = x + attn + bout
    o_ref[...] = x                       # post-attention residual, back to VMEM block

    # ---------------- MLP (pre-LN, QuickGELU), chunked over rows ----------------
    # Read-modify-write per row chunk so the (rows, 4D) f32 hidden never fully
    # materializes; LayerNorm is per-row so chunking is exact.
    wfc = wfc_ref[0]                     # (D, 4D) bf16
    wproj = wproj_ref[0]                 # (4D, D) bf16
    for c in range(RW // mlp_chunk_rows):
        r0 = c * mlp_chunk_rows
        xc = o_ref[r0:r0 + mlp_chunk_rows, :]                     # (chunk, D) f32
        zc = _ln(xc, ln2_g, ln2_b).astype(wfc.dtype)
        hc = jnp.dot(zc, wfc, preferred_element_type=jnp.float32) + bfc
        hc = hc.astype(gelu_dtype)
        hc = hc * jax.nn.sigmoid(1.702 * hc)                      # QuickGELU
        mc = jnp.dot(hc.astype(wproj.dtype), wproj,
                     preferred_element_type=jnp.float32) + bproj
        o_ref[r0:r0 + mlp_chunk_rows, :] = xc + mc


# ---------------------------------------------------------------------------
# Final LayerNorm + text projection on the gathered EOT rows.
# ---------------------------------------------------------------------------
def ln_proj_kernel(x_ref, g_ref, b_ref, proj_ref, o_ref):
    # LayerNorm is per-row, so ln_final(x)[eot] == ln_final(x[eot]).
    y = _ln(x_ref[...].astype(jnp.float32), g_ref[...], b_ref[...])
    o_ref[...] = jnp.dot(y, proj_ref[...],
                         preferred_element_type=jnp.float32).astype(o_ref.dtype)


# ---------------------------------------------------------------------------
# Host-side parameter packing: stack per-layer weights, transpose to (in, out),
# cast matmul weights to bf16; all small params packed into one f32 slab.
# ---------------------------------------------------------------------------
def pack_params(params):
    layers = params["layers"]

    def stk(name):
        return jnp.stack([l[name] for l in layers], axis=0)

    def t_bf16(name):  # (n, out, in) -> (n, in, out), bf16
        return jnp.swapaxes(stk(name), 1, 2).astype(jnp.bfloat16)

    # Slab layout must match the `cut` offsets in transformer_kernel.
    slab = jnp.concatenate(
        [stk("ln1_g"), stk("ln1_b"), stk("ln2_g"), stk("ln2_b"),
         stk("bout"), stk("bproj"), stk("bqkv"), stk("bfc")],
        axis=-1).astype(jnp.float32)                             # (n, 1, 13D)

    return dict(
        slab=slab,
        wqkv=t_bf16("wqkv"),       # (n, D, 3D)
        wout=t_bf16("wout"),       # (n, D, D)
        wfc=t_bf16("wfc"),         # (n, D, 4D)
        wproj=t_bf16("wproj"),     # (n, 4D, D)
    )


def text_encoder_forward(prompts, tokenized_prompts, params, packed,
                         *, batch_chunk=None, mlp_row_chunk=512):
    B, L, D = prompts.shape
    n_layers = packed["wqkv"].shape[0]
    H = params["num_heads"]
    E = params["text_proj"].shape[1]

    # Pad the sequence to a sublane multiple (77 -> 80 for CLIP): the flatten to
    # (B*Lp, D) becomes layout-free.  Causal mask keeps padded keys out of real
    # query rows; padded query rows are dropped by the EOT gather below.
    Lp = ((L + 7) // 8) * 8
    x0 = prompts.astype(jnp.float32) + params["pos_emb"][:L][None].astype(jnp.float32)
    if Lp != L:
        x0 = jnp.pad(x0, ((0, 0), (0, Lp - L), (0, 0)))
    x0 = x0.reshape(B * Lp, D)

    if batch_chunk is None:
        batch_chunk = _largest_divisor_leq(B, max(1, 2048 // Lp))
    assert B % batch_chunk == 0
    RW = batch_chunk * Lp
    mlp_chunk = _largest_divisor_leq(RW, max(8, mlp_row_chunk))
    assert RW % mlp_chunk == 0

    per_chunk = lambda b, l: (b, 0)      # residual block: resident across layers
    per_layer = lambda b, l: (l, 0, 0)   # weight slabs: next layer prefetched

    x = pl.pallas_call(
        functools.partial(transformer_kernel, num_heads=H, seq_len=Lp,
                          mlp_chunk_rows=mlp_chunk, gelu_dtype=_gelu_dtype()),
        out_shape=jax.ShapeDtypeStruct((B * Lp, D), jnp.float32),
        grid=(B // batch_chunk, n_layers),
        in_specs=[
            pl.BlockSpec((RW, D), per_chunk),            # x0 seed (read at layer 0)
            pl.BlockSpec((1, 1, 13 * D), per_layer),     # packed small params (f32)
            pl.BlockSpec((1, D, 3 * D), per_layer),      # wqkv (in, out) bf16
            pl.BlockSpec((1, D, D), per_layer),          # wout
            pl.BlockSpec((1, D, 4 * D), per_layer),      # wfc
            pl.BlockSpec((1, 4 * D, D), per_layer),      # wproj
        ],
        out_specs=pl.BlockSpec((RW, D), per_chunk),
        compiler_params=pltpu.CompilerParams(
            dimension_semantics=("parallel", "arbitrary"),
            vmem_limit_bytes=_vmem_limit_bytes(),
        ),
    )(x0, packed["slab"], packed["wqkv"], packed["wout"],
      packed["wfc"], packed["wproj"])

    # EOT gather: only B rows leave HBM (cheap XLA gather of the argmax rows),
    # then one fused LayerNorm + text-projection kernel.
    eot = jnp.argmax(tokenized_prompts, axis=-1)                 # (B,)
    rows = jnp.arange(B, dtype=eot.dtype) * Lp + eot
    x_eot = x[rows]                                              # (B, D)

    return pl.pallas_call(
        ln_proj_kernel,
        out_shape=jax.ShapeDtypeStruct((B, E), jnp.float32),
        in_specs=[pl.BlockSpec(memory_space=pltpu.MemorySpace.VMEM)] * 4,
        out_specs=pl.BlockSpec(memory_space=pltpu.MemorySpace.VMEM),
    )(x_eot, params["lnf_g"], params["lnf_b"], params["text_proj"])
    # TODO(synk): CUT_CONTEXTLEN / checkpoint_sequential branch is a training-time
    # activation-memory optimization; forward semantics are identical to the above.


# ---------------------------------------------------------------------------
# PyTorch-layout parameter construction (as clip_model.transformer stores them)
# ---------------------------------------------------------------------------
def init_params(key, *, n_layers, D, num_heads, E, L):
    scale = 0.02
    keys = jax.random.split(key, n_layers + 2)
    layers = []
    for i in range(n_layers):
        lk = jax.random.split(keys[i], 4)
        layers.append(dict(
            ln1_g=jnp.ones((1, D), jnp.float32), ln1_b=jnp.zeros((1, D), jnp.float32),
            wqkv=scale * jax.random.normal(lk[0], (3 * D, D), jnp.float32),   # in_proj_weight
            bqkv=jnp.zeros((1, 3 * D), jnp.float32),
            wout=scale * jax.random.normal(lk[1], (D, D), jnp.float32),       # out_proj.weight
            bout=jnp.zeros((1, D), jnp.float32),
            ln2_g=jnp.ones((1, D), jnp.float32), ln2_b=jnp.zeros((1, D), jnp.float32),
            wfc=scale * jax.random.normal(lk[2], (4 * D, D), jnp.float32),    # mlp.c_fc.weight
            bfc=jnp.zeros((1, 4 * D), jnp.float32),
            wproj=scale * jax.random.normal(lk[3], (D, 4 * D), jnp.float32),  # mlp.c_proj.weight
            bproj=jnp.zeros((1, D), jnp.float32),
        ))
    pos_emb = scale * jax.random.normal(keys[-2], (L, D), jnp.float32)
    text_proj = scale * jax.random.normal(keys[-1], (D, E), jnp.float32)
    return dict(layers=layers, pos_emb=pos_emb, text_proj=text_proj,
                num_heads=num_heads,
                lnf_g=jnp.ones((1, D), jnp.float32),
                lnf_b=jnp.zeros((1, D), jnp.float32))


# ---------------------------------------------------------------------------
# Pure-JAX f32 reference (mirrors the PyTorch forward) for a sanity check.
# ---------------------------------------------------------------------------
def reference_forward(prompts, tokenized_prompts, params):
    x = prompts + params["pos_emb"][None]
    B, L, D = x.shape
    H = params["num_heads"]
    Dh = D // H
    mask = jnp.triu(jnp.full((L, L), -jnp.inf, jnp.float32), k=1)
    for lyr in params["layers"]:
        y = _ln(x, lyr["ln1_g"], lyr["ln1_b"])
        qkv = y @ lyr["wqkv"].T + lyr["bqkv"][0]
        q, k, v = jnp.split(qkv, 3, axis=-1)
        sh = lambda t: t.reshape(B, L, H, Dh).transpose(0, 2, 1, 3)
        qh, kh, vh = sh(q), sh(k), sh(v)
        s = jnp.einsum("bhqd,bhkd->bhqk", qh, kh) / jnp.sqrt(Dh) + mask
        p = jax.nn.softmax(s, axis=-1)
        o = jnp.einsum("bhqk,bhkd->bhqd", p, vh).transpose(0, 2, 1, 3).reshape(B, L, D)
        x = x + o @ lyr["wout"].T + lyr["bout"][0]
        z = _ln(x, lyr["ln2_g"], lyr["ln2_b"])
        hdn = z @ lyr["wfc"].T + lyr["bfc"][0]
        hdn = hdn * jax.nn.sigmoid(1.702 * hdn)
        x = x + hdn @ lyr["wproj"].T + lyr["bproj"][0]
    eot = jnp.argmax(tokenized_prompts, axis=-1)
    xe = x[jnp.arange(B), eot]
    return _ln(xe, params["lnf_g"], params["lnf_b"]) @ params["text_proj"]


if __name__ == "__main__":
    # Small shapes; L=13 deliberately non-multiple-of-8 to exercise padding (13->16).
    B, L, D, H, n_layers, E = 2, 13, 32, 4, 2, 32
    key = jax.random.PRNGKey(0)
    kp, kt, kw = jax.random.split(key, 3)

    params = init_params(kw, n_layers=n_layers, D=D, num_heads=H, E=E, L=L)
    packed = pack_params(params)
    prompts = 0.02 * jax.random.normal(kp, (B, L, D), jnp.float32)

    tokenized_prompts = jax.random.randint(kt, (B, L), 1, 100, dtype=jnp.int32)
    eot_pos = jnp.array([5, 3], dtype=jnp.int32)
    tokenized_prompts = tokenized_prompts.at[jnp.arange(B), eot_pos].set(999)  # EOT = argmax

    # batch_chunk=1 / mlp_row_chunk=8 exercise the multi-chunk batch grid axis and
    # the chunked-MLP loop at toy sizes (defaults pick larger chunks for real shapes).
    out = text_encoder_forward(prompts, tokenized_prompts, params, packed,
                               batch_chunk=1, mlp_row_chunk=8)
    out = jax.block_until_ready(out)

    assert out.shape == (B, E) and out.dtype == jnp.float32
    assert bool(jnp.all(jnp.isfinite(out)))

    # Loose tolerance: kernel uses bf16 matmul operands (reference is pure f32).
    ref = reference_forward(prompts, tokenized_prompts, params)
    err = float(jnp.max(jnp.abs(out - ref)))
    assert err < 2e-2, err

    print("KERNEL_OK")
</pallas_src>

<mosaic_0001>
module attributes {stable_mosaic.version = 11 : i64} {
  func.func @transformer_kernel(%arg0: i32, %arg1: i32, %arg2: memref<16x32xf32, #tpu.memory_space<vmem>>, %arg3: memref<1x1x416xf32, #tpu.memory_space<vmem>>, %arg4: memref<1x32x96xbf16, #tpu.memory_space<vmem>>, %arg5: memref<1x32x32xbf16, #tpu.memory_space<vmem>>, %arg6: memref<1x32x128xbf16, #tpu.memory_space<vmem>>, %arg7: memref<1x128x32xbf16, #tpu.memory_space<vmem>>, %arg8: memref<16x32xf32, #tpu.memory_space<vmem>>) attributes {dimension_semantics = [#tpu.dimension_semantics<parallel>, #tpu.dimension_semantics<arbitrary>], iteration_bounds = array<i64: 2, 2>, scalar_prefetch = 0 : i64, scratch_operands = 0 : i64, tpu.core_type = #tpu.core_type<tc>, window_params = [{transform_indices = @transform_0, window_bounds = array<i64: 16, 32>}, {transform_indices = @transform_1, window_bounds = array<i64: 1, 1, 416>}, {transform_indices = @transform_2, window_bounds = array<i64: 1, 32, 96>}, {transform_indices = @transform_3, window_bounds = array<i64: 1, 32, 32>}, {transform_indices = @transform_4, window_bounds = array<i64: 1, 32, 128>}, {transform_indices = @transform_5, window_bounds = array<i64: 1, 128, 32>}, {transform_indices = @transform_6, window_bounds = array<i64: 16, 32>}]} {
    %c0_i32 = arith.constant 0 : i32
    %0 = arith.cmpi eq, %arg1, %c0_i32 : i32
    %1 = arith.extui %0 : i1 to i32
    %c0_i32_0 = arith.constant 0 : i32
    %2 = arith.cmpi ne, %1, %c0_i32_0 : i32
    scf.if %2 {
      %c0_98 = arith.constant 0 : index
      %c0_99 = arith.constant 0 : index
      %257 = vector.load %arg2[%c0_98, %c0_99] : memref<16x32xf32, #tpu.memory_space<vmem>>, vector<16x32xf32>
      %c0_100 = arith.constant 0 : index
      %c0_101 = arith.constant 0 : index
      %258 = vector.load %arg8[%c0_100, %c0_101] : memref<16x32xf32, #tpu.memory_space<vmem>>, vector<16x32xf32>
      tpu.vector_store %arg8[%c0_100, %c0_101], %257 {strides = array<i32>} : memref<16x32xf32, #tpu.memory_space<vmem>>, vector<16x32xf32>,
    } else {
    }
    %c0 = arith.constant 0 : index
    %c0_1 = arith.constant 0 : index
    %3 = vector.load %arg8[%c0, %c0_1] : memref<16x32xf32, #tpu.memory_space<vmem>>, vector<16x32xf32>
    %c0_2 = arith.constant 0 : index
    %c0_3 = arith.constant 0 : index
    %c0_4 = arith.constant 0 : index
    %4 = vector.load %arg3[%c0_2, %c0_3, %c0_4] : memref<1x1x416xf32, #tpu.memory_space<vmem>>, vector<1x1x32xf32>
    %5 = vector.shape_cast %4 : vector<1x1x32xf32> to vector<1x32xf32>
    %c0_5 = arith.constant 0 : index
    %c0_6 = arith.constant 0 : index
    %c32 = arith.constant 32 : index
    %6 = vector.load %arg3[%c0_5, %c0_6, %c32] : memref<1x1x416xf32, #tpu.memory_space<vmem>>, vector<1x1x32xf32>
    %7 = vector.shape_cast %6 : vector<1x1x32xf32> to vector<1x32xf32>
    %c0_7 = arith.constant 0 : index
    %c0_8 = arith.constant 0 : index
    %c64 = arith.constant 64 : index
    %8 = vector.load %arg3[%c0_7, %c0_8, %c64] : memref<1x1x416xf32, #tpu.memory_space<vmem>>, vector<1x1x32xf32>
    %9 = vector.shape_cast %8 : vector<1x1x32xf32> to vector<1x32xf32>
    %c0_9 = arith.constant 0 : index
    %c0_10 = arith.constant 0 : index
    %c96 = arith.constant 96 : index
    %10 = vector.load %arg3[%c0_9, %c0_10, %c96] : memref<1x1x416xf32, #tpu.memory_space<vmem>>, vector<1x1x32xf32>
    %11 = vector.shape_cast %10 : vector<1x1x32xf32> to vector<1x32xf32>
    %c0_11 = arith.constant 0 : index
    %c0_12 = arith.constant 0 : index
    %c128 = arith.constant 128 : index
    %12 = vector.load %arg3[%c0_11, %c0_12, %c128] : memref<1x1x416xf32, #tpu.memory_space<vmem>>, vector<1x1x32xf32>
    %13 = vector.shape_cast %12 : vector<1x1x32xf32> to vector<1x32xf32>
    %c0_13 = arith.constant 0 : index
    %c0_14 = arith.constant 0 : index
    %c160 = arith.constant 160 : index
    %14 = vector.load %arg3[%c0_13, %c0_14, %c160] : memref<1x1x416xf32, #tpu.memory_space<vmem>>, vector<1x1x32xf32>
    %15 = vector.shape_cast %14 : vector<1x1x32xf32> to vector<1x32xf32>
    %c0_15 = arith.constant 0 : index
    %c0_16 = arith.constant 0 : index
    %c192 = arith.constant 192 : index
    %16 = vector.load %arg3[%c0_15, %c0_16, %c192] : memref<1x1x416xf32, #tpu.memory_space<vmem>>, vector<1x1x96xf32>
    %17 = vector.shape_cast %16 : vector<1x1x96xf32> to vector<1x96xf32>
    %c0_17 = arith.constant 0 : index
    %c0_18 = arith.constant 0 : index
    %c288 = arith.constant 288 : index
    %18 = vector.load %arg3[%c0_17, %c0_18, %c288] : memref<1x1x416xf32, #tpu.memory_space<vmem>>, vector<1x1x128xf32>
    %19 = vector.shape_cast %18 : vector<1x1x128xf32> to vector<1x128xf32>
    %c0_19 = arith.constant 0 : index
    %c0_20 = arith.constant 0 : index
    %c0_21 = arith.constant 0 : index
    %20 = vector.load %arg4[%c0_19, %c0_20, %c0_21] : memref<1x32x96xbf16, #tpu.memory_space<vmem>>, vector<1x32x96xbf16>
    %21 = vector.shape_cast %20 : vector<1x32x96xbf16> to vector<32x96xbf16>
    %cst = arith.constant dense<0.000000e+00> : vector<16xf32>
    %22 = vector.multi_reduction <add>, %3, %cst [1] : vector<16x32xf32> to vector<16xf32>
    %23 = vector.shape_cast %22 : vector<16xf32> to vector<16x1xf32>
    %cst_22 = arith.constant 3.200000e+01 : f32
    %24 = vector.broadcast %cst_22 : f32 to vector<16x1xf32>
    %25 = arith.divf %23, %24 : vector<16x1xf32>
    %26 = vector.broadcast %25 : vector<16x1xf32> to vector<16x32xf32>
    %27 = arith.subf %3, %26 : vector<16x32xf32>
    %28 = arith.mulf %27, %27 : vector<16x32xf32>
    %cst_23 = arith.constant dense<0.000000e+00> : vector<16xf32>
    %29 = vector.multi_reduction <add>, %28, %cst_23 [1] : vector<16x32xf32> to vector<16xf32>
    %30 = vector.shape_cast %29 : vector<16xf32> to vector<16x1xf32>
    %cst_24 = arith.constant 3.200000e+01 : f32
    %31 = vector.broadcast %cst_24 : f32 to vector<16x1xf32>
    %32 = arith.divf %30, %31 : vector<16x1xf32>
    %33 = vector.broadcast %25 : vector<16x1xf32> to vector<16x32xf32>
    %34 = arith.subf %3, %33 : vector<16x32xf32>
    %cst_25 = arith.constant 9.99999974E-6 : f32
    %35 = vector.broadcast %cst_25 : f32 to vector<16x1xf32>
    %36 = arith.addf %32, %35 : vector<16x1xf32>
    %37 = math.rsqrt %36 : vector<16x1xf32>
    %38 = vector.broadcast %37 : vector<16x1xf32> to vector<16x32xf32>
    %39 = arith.mulf %34, %38 : vector<16x32xf32>
    %40 = vector.broadcast %5 : vector<1x32xf32> to vector<16x32xf32>
    %41 = arith.mulf %39, %40 : vector<16x32xf32>
    %42 = vector.broadcast %7 : vector<1x32xf32> to vector<16x32xf32>
    %43 = arith.addf %41, %42 : vector<16x32xf32>
    %44 = arith.truncf %43 : vector<16x32xf32> to vector<16x32xbf16>
    %cst_26 = arith.constant dense<0.000000e+00> : vector<16x96xf32>
    %45 = tpu.matmul %44, %21, %cst_26 {dimension_numbers = #tpu.dot_dimension_numbers<[1], [0], [0], [1], [0, 0, 1, 1], [], []>} : vector<16x32xbf16>, vector<32x96xbf16>, vector<16x96xf32> -> vector<16x96xf32>
    %46 = vector.broadcast %17 : vector<1x96xf32> to vector<16x96xf32>
    %47 = arith.addf %45, %46 : vector<16x96xf32>
    %48 = arith.truncf %47 : vector<16x96xf32> to vector<16x96xbf16>
    %49 = tpu.iota {dimensions = array<i32: 0>} : vector<16x16xi32>
    %50 = tpu.iota {dimensions = array<i32: 1>} : vector<16x16xi32>
    %51 = arith.cmpi sge, %49, %50 : vector<16x16xi32>
    %52 = vector.extract_strided_slice %48 {offsets = [0, 0], sizes = [16, 8], strides = [1, 1]} : vector<16x96xbf16> to vector<16x8xbf16>
    %53 = vector.shape_cast %52 : vector<16x8xbf16> to vector<1x16x8xbf16>
    %54 = vector.extract_strided_slice %48 {offsets = [0, 32], sizes = [16, 8], strides = [1, 1]} : vector<16x96xbf16> to vector<16x8xbf16>
    %55 = vector.shape_cast %54 : vector<16x8xbf16> to vector<1x16x8xbf16>
    %56 = vector.extract_strided_slice %48 {offsets = [0, 64], sizes = [16, 8], strides = [1, 1]} : vector<16x96xbf16> to vector<16x8xbf16>
    %57 = vector.shape_cast %56 : vector<16x8xbf16> to vector<1x16x8xbf16>
    "tpu.trace_start"() <{level = 10 : i32, message = "bqd,bkd->bqk"}> : () -> ()
    %cst_27 = arith.constant dense<0.000000e+00> : vector<1x16x16xf32>
    %58 = tpu.matmul %53, %55, %cst_27 {dimension_numbers = #tpu.dot_dimension_numbers<[2], [2], [1], [1], [0, 0, 0, 1, 1, 1], [0], [0]>} : vector<1x16x8xbf16>, vector<1x16x8xbf16>, vector<1x16x16xf32> -> vector<1x16x16xf32>
    "tpu.trace_stop"() : () -> ()
    %cst_28 = arith.constant 0.353553385 : f32
    %59 = vector.broadcast %cst_28 : f32 to vector<1x16x16xf32>
    %60 = arith.mulf %58, %59 : vector<1x16x16xf32>
    %cst_29 = arith.constant -1.000000e+30 : f32
    %61 = vector.shape_cast %51 : vector<16x16xi1> to vector<1x16x16xi1>
    %62 = vector.broadcast %cst_29 : f32 to vector<1x16x16xf32>
    %63 = arith.select %61, %60, %62 : vector<1x16x16xi1>, vector<1x16x16xf32>
    %cst_30 = arith.constant dense<0xFF800000> : vector<1x16xf32>
    %64 = vector.multi_reduction <maximumf>, %63, %cst_30 [2] : vector<1x16x16xf32> to vector<1x16xf32>
    %65 = vector.shape_cast %64 : vector<1x16xf32> to vector<1x16x1xf32>
    %66 = vector.broadcast %65 : vector<1x16x1xf32> to vector<1x16x16xf32>
    %67 = arith.subf %63, %66 : vector<1x16x16xf32>
    %68 = math.exp %67 : vector<1x16x16xf32>
    %cst_31 = arith.constant dense<0.000000e+00> : vector<1x16xf32>
    %69 = vector.multi_reduction <add>, %68, %cst_31 [2] : vector<1x16x16xf32> to vector<1x16xf32>
    %70 = vector.shape_cast %69 : vector<1x16xf32> to vector<1x16x1xf32>
    %71 = arith.truncf %68 : vector<1x16x16xf32> to vector<1x16x16xbf16>
    "tpu.trace_start"() <{level = 10 : i32, message = "bqk,bkd->bqd"}> : () -> ()
    %cst_32 = arith.constant dense<0.000000e+00> : vector<1x16x8xf32>
    %72 = tpu.matmul %71, %57, %cst_32 {dimension_numbers = #tpu.dot_dimension_numbers<[2], [1], [1], [2], [0, 0, 0, 1, 1, 2], [0], [0]>} : vector<1x16x16xbf16>, vector<1x16x8xbf16>, vector<1x16x8xf32> -> vector<1x16x8xf32>
    "tpu.trace_stop"() : () -> ()
    %73 = vector.broadcast %70 : vector<1x16x1xf32> to vector<1x16x8xf32>
    %74 = arith.divf %72, %73 : vector<1x16x8xf32>
    %75 = vector.shape_cast %74 : vector<1x16x8xf32> to vector<16x8xf32>
    %76 = arith.truncf %75 : vector<16x8xf32> to vector<16x8xbf16>
    %c0_33 = arith.constant 0 : index
    %c0_34 = arith.constant 0 : index
    %c0_35 = arith.constant 0 : index
    %77 = vector.load %arg5[%c0_33, %c0_34, %c0_35] : memref<1x32x32xbf16, #tpu.memory_space<vmem>>, vector<1x8x32xbf16>
    %78 = vector.shape_cast %77 : vector<1x8x32xbf16> to vector<8x32xbf16>
    %cst_36 = arith.constant dense<0.000000e+00> : vector<16x32xf32>
    %79 = tpu.matmul %76, %78, %cst_36 {dimension_numbers = #tpu.dot_dimension_numbers<[1], [0], [0], [1], [0, 0, 1, 1], [], []>} : vector<16x8xbf16>, vector<8x32xbf16>, vector<16x32xf32> -> vector<16x32xf32>
    %80 = vector.extract_strided_slice %48 {offsets = [0, 8], sizes = [16, 8], strides = [1, 1]} : vector<16x96xbf16> to vector<16x8xbf16>
    %81 = vector.shape_cast %80 : vector<16x8xbf16> to vector<1x16x8xbf16>
    %82 = vector.extract_strided_slice %48 {offsets = [0, 40], sizes = [16, 8], strides = [1, 1]} : vector<16x96xbf16> to vector<16x8xbf16>
    %83 = vector.shape_cast %82 : vector<16x8xbf16> to vector<1x16x8xbf16>
    %84 = vector.extract_strided_slice %48 {offsets = [0, 72], sizes = [16, 8], strides = [1, 1]} : vector<16x96xbf16> to vector<16x8xbf16>
    %85 = vector.shape_cast %84 : vector<16x8xbf16> to vector<1x16x8xbf16>
    "tpu.trace_start"() <{level = 10 : i32, message = "bqd,bkd->bqk"}> : () -> ()
    %cst_37 = arith.constant dense<0.000000e+00> : vector<1x16x16xf32>
    %86 = tpu.matmul %81, %83, %cst_37 {dimension_numbers = #tpu.dot_dimension_numbers<[2], [2], [1], [1], [0, 0, 0, 1, 1, 1], [0], [0]>} : vector<1x16x8xbf16>, vector<1x16x8xbf16>, vector<1x16x16xf32> -> vector<1x16x16xf32>
    "tpu.trace_stop"() : () -> ()
    %cst_38 = arith.constant 0.353553385 : f32
    %87 = vector.broadcast %cst_38 : f32 to vector<1x16x16xf32>
    %88 = arith.mulf %86, %87 : vector<1x16x16xf32>
    %cst_39 = arith.constant -1.000000e+30 : f32
    %89 = vector.shape_cast %51 : vector<16x16xi1> to vector<1x16x16xi1>
    %90 = vector.broadcast %cst_39 : f32 to vector<1x16x16xf32>
    %91 = arith.select %89, %88, %90 : vector<1x16x16xi1>, vector<1x16x16xf32>
    %cst_40 = arith.constant dense<0xFF800000> : vector<1x16xf32>
    %92 = vector.multi_reduction <maximumf>, %91, %cst_40 [2] : vector<1x16x16xf32> to vector<1x16xf32>
    %93 = vector.shape_cast %92 : vector<1x16xf32> to vector<1x16x1xf32>
    %94 = vector.broadcast %93 : vector<1x16x1xf32> to vector<1x16x16xf32>
    %95 = arith.subf %91, %94 : vector<1x16x16xf32>
    %96 = math.exp %95 : vector<1x16x16xf32>
    %cst_41 = arith.constant dense<0.000000e+00> : vector<1x16xf32>
    %97 = vector.multi_reduction <add>, %96, %cst_41 [2] : vector<1x16x16xf32> to vector<1x16xf32>
    %98 = vector.shape_cast %97 : vector<1x16xf32> to vector<1x16x1xf32>
    %99 = arith.truncf %96 : vector<1x16x16xf32> to vector<1x16x16xbf16>
    "tpu.trace_start"() <{level = 10 : i32, message = "bqk,bkd->bqd"}> : () -> ()
    %cst_42 = arith.constant dense<0.000000e+00> : vector<1x16x8xf32>
    %100 = tpu.matmul %99, %85, %cst_42 {dimension_numbers = #tpu.dot_dimension_numbers<[2], [1], [1], [2], [0, 0, 0, 1, 1, 2], [0], [0]>} : vector<1x16x16xbf16>, vector<1x16x8xbf16>, vector<1x16x8xf32> -> vector<1x16x8xf32>
    "tpu.trace_stop"() : () -> ()
    %101 = vector.broadcast %98 : vector<1x16x1xf32> to vector<1x16x8xf32>
    %102 = arith.divf %100, %101 : vector<1x16x8xf32>
    %103 = vector.shape_cast %102 : vector<1x16x8xf32> to vector<16x8xf32>
    %104 = arith.truncf %103 : vector<16x8xf32> to vector<16x8xbf16>
    %c0_43 = arith.constant 0 : index
    %c8 = arith.constant 8 : index
    %c0_44 = arith.constant 0 : index
    %105 = vector.load %arg5[%c0_43, %c8, %c0_44] : memref<1x32x32xbf16, #tpu.memory_space<vmem>>, vector<1x8x32xbf16>
    %106 = vector.shape_cast %105 : vector<1x8x32xbf16> to vector<8x32xbf16>
    %cst_45 = arith.constant dense<0.000000e+00> : vector<16x32xf32>
    %107 = tpu.matmul %104, %106, %cst_45 {dimension_numbers = #tpu.dot_dimension_numbers<[1], [0], [0], [1], [0, 0, 1, 1], [], []>} : vector<16x8xbf16>, vector<8x32xbf16>, vector<16x32xf32> -> vector<16x32xf32>
    %108 = arith.addf %79, %107 : vector<16x32xf32>
    %109 = vector.extract_strided_slice %48 {offsets = [0, 16], sizes = [16, 8], strides = [1, 1]} : vector<16x96xbf16> to vector<16x8xbf16>
    %110 = vector.shape_cast %109 : vector<16x8xbf16> to vector<1x16x8xbf16>
    %111 = vector.extract_strided_slice %48 {offsets = [0, 48], sizes = [16, 8], strides = [1, 1]} : vector<16x96xbf16> to vector<16x8xbf16>
    %112 = vector.shape_cast %111 : vector<16x8xbf16> to vector<1x16x8xbf16>
    %113 = vector.extract_strided_slice %48 {offsets = [0, 80], sizes = [16, 8], strides = [1, 1]} : vector<16x96xbf16> to vector<16x8xbf16>
    %114 = vector.shape_cast %113 : vector<16x8xbf16> to vector<1x16x8xbf16>
    "tpu.trace_start"() <{level = 10 : i32, message = "bqd,bkd->bqk"}> : () -> ()
    %cst_46 = arith.constant dense<0.000000e+00> : vector<1x16x16xf32>
    %115 = tpu.matmul %110, %112, %cst_46 {dimension_numbers = #tpu.dot_dimension_numbers<[2], [2], [1], [1], [0, 0, 0, 1, 1, 1], [0], [0]>} : vector<1x16x8xbf16>, vector<1x16x8xbf16>, vector<1x16x16xf32> -> vector<1x16x16xf32>
    "tpu.trace_stop"() : () -> ()
    %cst_47 = arith.constant 0.353553385 : f32
    %116 = vector.broadcast %cst_47 : f32 to vector<1x16x16xf32>
    %117 = arith.mulf %115, %116 : vector<1x16x16xf32>
    %cst_48 = arith.constant -1.000000e+30 : f32
    %118 = vector.shape_cast %51 : vector<16x16xi1> to vector<1x16x16xi1>
    %119 = vector.broadcast %cst_48 : f32 to vector<1x16x16xf32>
    %120 = arith.select %118, %117, %119 : vector<1x16x16xi1>, vector<1x16x16xf32>
    %cst_49 = arith.constant dense<0xFF800000> : vector<1x16xf32>
    %121 = vector.multi_reduction <maximumf>, %120, %cst_49 [2] : vector<1x16x16xf32> to vector<1x16xf32>
    %122 = vector.shape_cast %121 : vector<1x16xf32> to vector<1x16x1xf32>
    %123 = vector.broadcast %122 : vector<1x16x1xf32> to vector<1x16x16xf32>
    %124 = arith.subf %120, %123 : vector<1x16x16xf32>
    %125 = math.exp %124 : vector<1x16x16xf32>
    %cst_50 = arith.constant dense<0.000000e+00> : vector<1x16xf32>
    %126 = vector.multi_reduction <add>, %125, %cst_50 [2] : vector<1x16x16xf32> to vector<1x16xf32>
    %127 = vector.shape_cast %126 : vector<1x16xf32> to vector<1x16x1xf32>
    %128 = arith.truncf %125 : vector<1x16x16xf32> to vector<1x16x16xbf16>
    "tpu.trace_start"() <{level = 10 : i32, message = "bqk,bkd->bqd"}> : () -> ()
    %cst_51 = arith.constant dense<0.000000e+00> : vector<1x16x8xf32>
    %129 = tpu.matmul %128, %114, %cst_51 {dimension_numbers = #tpu.dot_dimension_numbers<[2], [1], [1], [2], [0, 0, 0, 1, 1, 2], [0], [0]>} : vector<1x16x16xbf16>, vector<1x16x8xbf16>, vector<1x16x8xf32> -> vector<1x16x8xf32>
    "tpu.trace_stop"() : () -> ()
    %130 = vector.broadcast %127 : vector<1x16x1xf32> to vector<1x16x8xf32>
    %131 = arith.divf %129, %130 : vector<1x16x8xf32>
    %132 = vector.shape_cast %131 : vector<1x16x8xf32> to vector<16x8xf32>
    %133 = arith.truncf %132 : vector<16x8xf32> to vector<16x8xbf16>
    %c0_52 = arith.constant 0 : index
    %c16 = arith.constant 16 : index
    %c0_53 = arith.constant 0 : index
    %134 = vector.load %arg5[%c0_52, %c16, %c0_53] : memref<1x32x32xbf16, #tpu.memory_space<vmem>>, vector<1x8x32xbf16>
    %135 = vector.shape_cast %134 : vector<1x8x32xbf16> to vector<8x32xbf16>
    %cst_54 = arith.constant dense<0.000000e+00> : vector<16x32xf32>
    %136 = tpu.matmul %133, %135, %cst_54 {dimension_numbers = #tpu.dot_dimension_numbers<[1], [0], [0], [1], [0, 0, 1, 1], [], []>} : vector<16x8xbf16>, vector<8x32xbf16>, vector<16x32xf32> -> vector<16x32xf32>
    %137 = arith.addf %108, %136 : vector<16x32xf32>
    %138 = vector.extract_strided_slice %48 {offsets = [0, 24], sizes = [16, 8], strides = [1, 1]} : vector<16x96xbf16> to vector<16x8xbf16>
    %139 = vector.shape_cast %138 : vector<16x8xbf16> to vector<1x16x8xbf16>
    %140 = vector.extract_strided_slice %48 {offsets = [0, 56], sizes = [16, 8], strides = [1, 1]} : vector<16x96xbf16> to vector<16x8xbf16>
    %141 = vector.shape_cast %140 : vector<16x8xbf16> to vector<1x16x8xbf16>
    %142 = vector.extract_strided_slice %48 {offsets = [0, 88], sizes = [16, 8], strides = [1, 1]} : vector<16x96xbf16> to vector<16x8xbf16>
    %143 = vector.shape_cast %142 : vector<16x8xbf16> to vector<1x16x8xbf16>
    "tpu.trace_start"() <{level = 10 : i32, message = "bqd,bkd->bqk"}> : () -> ()
    %cst_55 = arith.constant dense<0.000000e+00> : vector<1x16x16xf32>
    %144 = tpu.matmul %139, %141, %cst_55 {dimension_numbers = #tpu.dot_dimension_numbers<[2], [2], [1], [1], [0, 0, 0, 1, 1, 1], [0], [0]>} : vector<1x16x8xbf16>, vector<1x16x8xbf16>, vector<1x16x16xf32> -> vector<1x16x16xf32>
    "tpu.trace_stop"() : () -> ()
    %cst_56 = arith.constant 0.353553385 : f32
    %145 = vector.broadcast %cst_56 : f32 to vector<1x16x16xf32>
    %146 = arith.mulf %144, %145 : vector<1x16x16xf32>
    %cst_57 = arith.constant -1.000000e+30 : f32
    %147 = vector.shape_cast %51 : vector<16x16xi1> to vector<1x16x16xi1>
    %148 = vector.broadcast %cst_57 : f32 to vector<1x16x16xf32>
    %149 = arith.select %147, %146, %148 : vector<1x16x16xi1>, vector<1x16x16xf32>
    %cst_58 = arith.constant dense<0xFF800000> : vector<1x16xf32>
    %150 = vector.multi_reduction <maximumf>, %149, %cst_58 [2] : vector<1x16x16xf32> to vector<1x16xf32>
    %151 = vector.shape_cast %150 : vector<1x16xf32> to vector<1x16x1xf32>
    %152 = vector.broadcast %151 : vector<1x16x1xf32> to vector<1x16x16xf32>
    %153 = arith.subf %149, %152 : vector<1x16x16xf32>
    %154 = math.exp %153 : vector<1x16x16xf32>
    %cst_59 = arith.constant dense<0.000000e+00> : vector<1x16xf32>
    %155 = vector.multi_reduction <add>, %154, %cst_59 [2] : vector<1x16x16xf32> to vector<1x16xf32>
    %156 = vector.shape_cast %155 : vector<1x16xf32> to vector<1x16x1xf32>
    %157 = arith.truncf %154 : vector<1x16x16xf32> to vector<1x16x16xbf16>
    "tpu.trace_start"() <{level = 10 : i32, message = "bqk,bkd->bqd"}> : () -> ()
    %cst_60 = arith.constant dense<0.000000e+00> : vector<1x16x8xf32>
    %158 = tpu.matmul %157, %143, %cst_60 {dimension_numbers = #tpu.dot_dimension_numbers<[2], [1], [1], [2], [0, 0, 0, 1, 1, 2], [0], [0]>} : vector<1x16x16xbf16>, vector<1x16x8xbf16>, vector<1x16x8xf32> -> vector<1x16x8xf32>
    "tpu.trace_stop"() : () -> ()
    %159 = vector.broadcast %156 : vector<1x16x1xf32> to vector<1x16x8xf32>
    %160 = arith.divf %158, %159 : vector<1x16x8xf32>
    %161 = vector.shape_cast %160 : vector<1x16x8xf32> to vector<16x8xf32>
    %162 = arith.truncf %161 : vector<16x8xf32> to vector<16x8xbf16>
    %c0_61 = arith.constant 0 : index
    %c24 = arith.constant 24 : index
    %c0_62 = arith.constant 0 : index
    %163 = vector.load %arg5[%c0_61, %c24, %c0_62] : memref<1x32x32xbf16, #tpu.memory_space<vmem>>, vector<1x8x32xbf16>
    %164 = vector.shape_cast %163 : vector<1x8x32xbf16> to vector<8x32xbf16>
    %cst_63 = arith.constant dense<0.000000e+00> : vector<16x32xf32>
    %165 = tpu.matmul %162, %164, %cst_63 {dimension_numbers = #tpu.dot_dimension_numbers<[1], [0], [0], [1], [0, 0, 1, 1], [], []>} : vector<16x8xbf16>, vector<8x32xbf16>, vector<16x32xf32> -> vector<16x32xf32>
    %166 = arith.addf %137, %165 : vector<16x32xf32>
    %167 = arith.addf %3, %166 : vector<16x32xf32>
    %168 = vector.broadcast %13 : vector<1x32xf32> to vector<16x32xf32>
    %169 = arith.addf %167, %168 : vector<16x32xf32>
    %c0_64 = arith.constant 0 : index
    %c0_65 = arith.constant 0 : index
    %170 = vector.load %arg8[%c0_64, %c0_65] : memref<16x32xf32, #tpu.memory_space<vmem>>, vector<16x32xf32>
    tpu.vector_store %arg8[%c0_64, %c0_65], %169 {strides = array<i32>} : memref<16x32xf32, #tpu.memory_space<vmem>>, vector<16x32xf32>,
    %c0_66 = arith.constant 0 : index
    %c0_67 = arith.constant 0 : index
    %c0_68 = arith.constant 0 : index
    %171 = vector.load %arg6[%c0_66, %c0_67, %c0_68] : memref<1x32x128xbf16, #tpu.memory_space<vmem>>, vector<1x32x128xbf16>
    %172 = vector.shape_cast %171 : vector<1x32x128xbf16> to vector<32x128xbf16>
    %c0_69 = arith.constant 0 : index
    %c0_70 = arith.constant 0 : index
    %c0_71 = arith.constant 0 : index
    %173 = vector.load %arg7[%c0_69, %c0_70, %c0_71] : memref<1x128x32xbf16, #tpu.memory_space<vmem>>, vector<1x128x32xbf16>
    %174 = vector.shape_cast %173 : vector<1x128x32xbf16> to vector<128x32xbf16>
    %c0_72 = arith.constant 0 : index
    %c0_73 = arith.constant 0 : index
    %175 = vector.load %arg8[%c0_72, %c0_73] : memref<16x32xf32, #tpu.memory_space<vmem>>, vector<8x32xf32>
    %cst_74 = arith.constant dense<0.000000e+00> : vector<8xf32>
    %176 = vector.multi_reduction <add>, %175, %cst_74 [1] : vector<8x32xf32> to vector<8xf32>
    %177 = vector.shape_cast %176 : vector<8xf32> to vector<8x1xf32>
    %cst_75 = arith.constant 3.200000e+01 : f32
    %178 = vector.broadcast %cst_75 : f32 to vector<8x1xf32>
    %179 = arith.divf %177, %178 : vector<8x1xf32>
    %180 = vector.broadcast %179 : vector<8x1xf32> to vector<8x32xf32>
    %181 = arith.subf %175, %180 : vector<8x32xf32>
    %182 = arith.mulf %181, %181 : vector<8x32xf32>
    %cst_76 = arith.constant dense<0.000000e+00> : vector<8xf32>
    %183 = vector.multi_reduction <add>, %182, %cst_76 [1] : vector<8x32xf32> to vector<8xf32>
    %184 = vector.shape_cast %183 : vector<8xf32> to vector<8x1xf32>
    %cst_77 = arith.constant 3.200000e+01 : f32
    %185 = vector.broadcast %cst_77 : f32 to vector<8x1xf32>
    %186 = arith.divf %184, %185 : vector<8x1xf32>
    %187 = vector.broadcast %179 : vector<8x1xf32> to vector<8x32xf32>
    %188 = arith.subf %175, %187 : vector<8x32xf32>
    %cst_78 = arith.constant 9.99999974E-6 : f32
    %189 = vector.broadcast %cst_78 : f32 to vector<8x1xf32>
    %190 = arith.addf %186, %189 : vector<8x1xf32>
    %191 = math.rsqrt %190 : vector<8x1xf32>
    %192 = vector.broadcast %191 : vector<8x1xf32> to vector<8x32xf32>
    %193 = arith.mulf %188, %192 : vector<8x32xf32>
    %194 = vector.broadcast %9 : vector<1x32xf32> to vector<8x32xf32>
    %195 = arith.mulf %193, %194 : vector<8x32xf32>
    %196 = vector.broadcast %11 : vector<1x32xf32> to vector<8x32xf32>
    %197 = arith.addf %195, %196 : vector<8x32xf32>
    %198 = arith.truncf %197 : vector<8x32xf32> to vector<8x32xbf16>
    %cst_79 = arith.constant dense<0.000000e+00> : vector<8x128xf32>
    %199 = tpu.matmul %198, %172, %cst_79 {dimension_numbers = #tpu.dot_dimension_numbers<[1], [0], [0], [1], [0, 0, 1, 1], [], []>} : vector<8x32xbf16>, vector<32x128xbf16>, vector<8x128xf32> -> vector<8x128xf32>
    %200 = vector.broadcast %19 : vector<1x128xf32> to vector<8x128xf32>
    %201 = arith.addf %199, %200 : vector<8x128xf32>
    %202 = arith.truncf %201 : vector<8x128xf32> to vector<8x128xbf16>
    %cst_80 = arith.constant 1.703130e+00 : bf16
    %203 = vector.broadcast %cst_80 : bf16 to vector<8x128xbf16>
    %204 = arith.mulf %203, %202 : vector<8x128xbf16>
    %205 = arith.negf %204 : vector<8x128xbf16>
    %206 = math.exp %205 : vector<8x128xbf16>
    %cst_81 = arith.constant 1.000000e+00 : bf16
    %207 = vector.broadcast %cst_81 : bf16 to vector<8x128xbf16>
    %208 = arith.addf %207, %206 : vector<8x128xbf16>
    %209 = arith.divf %207, %208 : vector<8x128xbf16>
    %210 = arith.mulf %202, %209 : vector<8x128xbf16>
    %cst_82 = arith.constant dense<0.000000e+00> : vector<8x32xf32>
    %211 = tpu.matmul %210, %174, %cst_82 {dimension_numbers = #tpu.dot_dimension_numbers<[1], [0], [0], [1], [0, 0, 1, 1], [], []>} : vector<8x128xbf16>, vector<128x32xbf16>, vector<8x32xf32> -> vector<8x32xf32>
    %212 = vector.broadcast %15 : vector<1x32xf32> to vector<8x32xf32>
    %213 = arith.addf %211, %212 : vector<8x32xf32>
    %214 = arith.addf %175, %213 : vector<8x32xf32>
    %c0_83 = arith.constant 0 : index
    %c0_84 = arith.constant 0 : index
    %215 = vector.load %arg8[%c0_83, %c0_84] : memref<16x32xf32, #tpu.memory_space<vmem>>, vector<8x32xf32>
    tpu.vector_store %arg8[%c0_83, %c0_84], %214 {strides = array<i32>} : memref<16x32xf32, #tpu.memory_space<vmem>>, vector<8x32xf32>,
    %c8_85 = arith.constant 8 : index
    %c0_86 = arith.constant 0 : index
    %216 = vector.load %arg8[%c8_85, %c0_86] : memref<16x32xf32, #tpu.memory_space<vmem>>, vector<8x32xf32>
    %cst_87 = arith.constant dense<0.000000e+00> : vector<8xf32>
    %217 = vector.multi_reduction <add>, %216, %cst_87 [1] : vector<8x32xf32> to vector<8xf32>
    %218 = vector.shape_cast %217 : vector<8xf32> to vector<8x1xf32>
    %cst_88 = arith.constant 3.200000e+01 : f32
    %219 = vector.broadcast %cst_88 : f32 to vector<8x1xf32>
    %220 = arith.divf %218, %219 : vector<8x1xf32>
    %221 = vector.broadcast %220 : vector<8x1xf32> to vector<8x32xf32>
    %222 = arith.subf %216, %221 : vector<8x32xf32>
    %223 = arith.mulf %222, %222 : vector<8x32xf32>
    %cst_89 = arith.constant dense<0.000000e+00> : vector<8xf32>
    %224 = vector.multi_reduction <add>, %223, %cst_89 [1] : vector<8x32xf32> to vector<8xf32>
    %225 = vector.shape_cast %224 : vector<8xf32> to vector<8x1xf32>
    %cst_90 = arith.constant 3.200000e+01 : f32
    %226 = vector.broadcast %cst_90 : f32 to vector<8x1xf32>
    %227 = arith.divf %225, %226 : vector<8x1xf32>
    %228 = vector.broadcast %220 : vector<8x1xf32> to vector<8x32xf32>
    %229 = arith.subf %216, %228 : vector<8x32xf32>
    %cst_91 = arith.constant 9.99999974E-6 : f32
    %230 = vector.broadcast %cst_91 : f32 to vector<8x1xf32>
    %231 = arith.addf %227, %230 : vector<8x1xf32>
    %232 = math.rsqrt %231 : vector<8x1xf32>
    %233 = vector.broadcast %232 : vector<8x1xf32> to vector<8x32xf32>
    %234 = arith.mulf %229, %233 : vector<8x32xf32>
    %235 = vector.broadcast %9 : vector<1x32xf32> to vector<8x32xf32>
    %236 = arith.mulf %234, %235 : vector<8x32xf32>
    %237 = vector.broadcast %11 : vector<1x32xf32> to vector<8x32xf32>
    %238 = arith.addf %236, %237 : vector<8x32xf32>
    %239 = arith.truncf %238 : vector<8x32xf32> to vector<8x32xbf16>
    %cst_92 = arith.constant dense<0.000000e+00> : vector<8x128xf32>
    %240 = tpu.matmul %239, %172, %cst_92 {dimension_numbers = #tpu.dot_dimension_numbers<[1], [0], [0], [1], [0, 0, 1, 1], [], []>} : vector<8x32xbf16>, vector<32x128xbf16>, vector<8x128xf32> -> vector<8x128xf32>
    %241 = vector.broadcast %19 : vector<1x128xf32> to vector<8x128xf32>
    %242 = arith.addf %240, %241 : vector<8x128xf32>
    %243 = arith.truncf %242 : vector<8x128xf32> to vector<8x128xbf16>
    %cst_93 = arith.constant 1.703130e+00 : bf16
    %244 = vector.broadcast %cst_93 : bf16 to vector<8x128xbf16>
    %245 = arith.mulf %244, %243 : vector<8x128xbf16>
    %246 = arith.negf %245 : vector<8x128xbf16>
    %247 = math.exp %246 : vector<8x128xbf16>
    %cst_94 = arith.constant 1.000000e+00 : bf16
    %248 = vector.broadcast %cst_94 : bf16 to vector<8x128xbf16>
    %249 = arith.addf %248, %247 : vector<8x128xbf16>
    %250 = arith.divf %248, %249 : vector<8x128xbf16>
    %251 = arith.mulf %243, %250 : vector<8x128xbf16>
    %cst_95 = arith.constant dense<0.000000e+00> : vector<8x32xf32>
    %252 = tpu.matmul %251, %174, %cst_95 {dimension_numbers = #tpu.dot_dimension_numbers<[1], [0], [0], [1], [0, 0, 1, 1], [], []>} : vector<8x128xbf16>, vector<128x32xbf16>, vector<8x32xf32> -> vector<8x32xf32>
    %253 = vector.broadcast %15 : vector<1x32xf32> to vector<8x32xf32>
    %254 = arith.addf %252, %253 : vector<8x32xf32>
    %255 = arith.addf %216, %254 : vector<8x32xf32>
    %c8_96 = arith.constant 8 : index
    %c0_97 = arith.constant 0 : index
    %256 = vector.load %arg8[%c8_96, %c0_97] : memref<16x32xf32, #tpu.memory_space<vmem>>, vector<8x32xf32>
    tpu.vector_store %arg8[%c8_96, %c0_97], %255 {strides = array<i32>} : memref<16x32xf32, #tpu.memory_space<vmem>>, vector<8x32xf32>,
    return
  }
  func.func @transform_0(%arg0: i32, %arg1: i32) -> (i32, i32) {
    %c0_i32 = arith.constant 0 : i32
    %c0_i32_0 = arith.constant 0 : i32
    return %arg0, %c0_i32 : i32, i32
  }
  func.func @transform_1(%arg0: i32, %arg1: i32) -> (i32, i32, i32) {
    %c0_i32 = arith.constant 0 : i32
    %c0_i32_0 = arith.constant 0 : i32
    %c0_i32_1 = arith.constant 0 : i32
    return %arg1, %c0_i32, %c0_i32_0 : i32, i32, i32
  }
  func.func @transform_2(%arg0: i32, %arg1: i32) -> (i32, i32, i32) {
    %c0_i32 = arith.constant 0 : i32
    %c0_i32_0 = arith.constant 0 : i32
    %c0_i32_1 = arith.constant 0 : i32
    return %arg1, %c0_i32, %c0_i32_0 : i32, i32, i32
  }
  func.func @transform_3(%arg0: i32, %arg1: i32) -> (i32, i32, i32) {
    %c0_i32 = arith.constant 0 : i32
    %c0_i32_0 = arith.constant 0 : i32
    %c0_i32_1 = arith.constant 0 : i32
    return %arg1, %c0_i32, %c0_i32_0 : i32, i32, i32
  }
  func.func @transform_4(%arg0: i32, %arg1: i32) -> (i32, i32, i32) {
    %c0_i32 = arith.constant 0 : i32
    %c0_i32_0 = arith.constant 0 : i32
    %c0_i32_1 = arith.constant 0 : i32
    return %arg1, %c0_i32, %c0_i32_0 : i32, i32, i32
  }
  func.func @transform_5(%arg0: i32, %arg1: i32) -> (i32, i32, i32) {
    %c0_i32 = arith.constant 0 : i32
    %c0_i32_0 = arith.constant 0 : i32
    %c0_i32_1 = arith.constant 0 : i32
    return %arg1, %c0_i32, %c0_i32_0 : i32, i32, i32
  }
  func.func @transform_6(%arg0: i32, %arg1: i32) -> (i32, i32) {
    %c0_i32 = arith.constant 0 : i32
    %c0_i32_0 = arith.constant 0 : i32
    return %arg0, %c0_i32 : i32, i32
  }
}

</mosaic_0001>

<bundles_post_ra>
// kernel: tpu_custom_call.1
= control target key start
LH: loop header
LB: loop body
LE: loop exit
PB: predicated region body
PF: predicated region fallthrough
CT: control target
= control target key end

     0   :  { %s3456_s0 = inlined_call_operand.hbm [shape: f32[32,32], index: 0, kind: input, shape index: {}]   ;;  %s3457_s1 = inlined_call_operand.hbm [shape: f32[2,1,416], index: 1, kind: input, shape index: {}]   ;;  %s3458_s2 = inlined_call_operand.hbm [shape: bf16[2,32,96], index: 2, kind: input, shape index: {}]   ;;  %s3459_s3 = inlined_call_operand.hbm [shape: bf16[2,32,32], index: 3, kind: input, shape index: {}]   ;;  %s3460_s4 = inlined_call_operand.hbm [shape: bf16[2,32,128], index: 4, kind: input, shape index: {}]   ;;  %s3461_s5 = inlined_call_operand.hbm [shape: bf16[2,128,32], index: 5, kind: input, shape index: {}]   ;;  %s3462_s6 = inlined_call_operand.hbm [shape: f32[32,32], index: 6, kind: output, shape index: {}]  }
   0x1   :  { %3488 = sst [smem:[#allocation30_spill]] %s3456_s0 }
   0x2   :  { %3489 = sst [smem:[#allocation31_spill]] %s3457_s1 }
   0x3   :  { %3490 = sst [smem:[#allocation32_spill]] %s3459_s3 }
   0x4   :  { %3491 = sst [smem:[#allocation33_spill]] %s3462_s6 }
   0x5   :  { %11 = vsyncpa [#allocation3], 0 }
   0x6   :  { %13 = vsyncpa [#allocation3 + $0x1], 0 }
   0x7   :  { %14 = vsyncpa [#allocation6], 0 }
   0x8   :  { %16 = vsyncpa [#allocation6 + $0x1], 0 }
   0x9   :  { %17 = vsyncpa [#allocation9], 0 }
   0xa   :  { %19 = vsyncpa [#allocation9 + $0x1], 0 }
   0xb   :  { %20 = vsyncpa [#allocation12], 0 }
   0xc   :  { %22 = vsyncpa [#allocation12 + $0x1], 0 }
   0xd   :  { %23 = vsyncpa [#allocation4], 0 }
   0xe   :  { %25 = vsyncpa [#allocation4 + $0x1], 0  ;;  %s2716_s21 = smov 0   ;;  %s2718_s22 = smov 0  }
   0xf   :  { %s2720_s23 = smov 0   ;;  %s2722_s24 = smov 0  }
  0x10   :  { %s2724_s25 = smov 0   ;;  %s2726_s26 = smov 0  }
  0x11   :  { %s2728_s27 = smov 0   ;;  %s2730_s28 = smov 0  }
  0x12   :  { %s2732_s29 = smov 0   ;;  %s2734_s30 = smov 0  }
  0x13   :  { %s2736_s7 = smov 0  }
  0x14 LB: > { %3492 = sst [smem:[#allocation19_spill]] %s2616_s22  ;;  %s2770_s8 = sadd.s32 4294967295, %s2652_s7   ;;  %s2652_s7 = sphi %s2736_s7, %s31_s7   ;;  %s2648_s30 = sphi %s2734_s30, %s3550_s30   ;;  %s2644_s29 = sphi %s2732_s29, %s3549_s29   ;;  %s2640_s28 = sphi %s2730_s28, %s3548_s28   ;;  %s2636_s27 = sphi %s2728_s27, %s3547_s27   ;;  %s2632_s26 = sphi %s2726_s26, %s3546_s26   ;;  %s2628_s25 = sphi %s2724_s25, %s3545_s25   ;;  %s2624_s24 = sphi %s2722_s24, %s3544_s24   ;;  %s2620_s23 = sphi %s2720_s23, %s3541_s23   ;;  %s2616_s22 = sphi %s2718_s22, %s3540_s22   ;;  %s2612_s21 = sphi %s2716_s21, %s3539_s21  }
  0x15   : > { %3493 = sst [smem:[#allocation20_spill]] %s2620_s23  ;;  %s40_s9 = sadd.s32 1, %s2644_s29 }
  0x16   : > { %3494 = sst [smem:[#allocation21_spill]] %s2624_s24  ;;  %p2773_p0 = scmp.ge.s32.totalorder %s40_s9, 2 }
  0x17   : > { %3495 = sst [smem:[#allocation22_spill]] %s2636_s27  ;;  %p3468_p1 = scmp.eq.s32.totalorder %s2652_s7, 0 }
  0x18   : > { %3496 = sst [smem:[#allocation23_spill]] %s2640_s28  ;;  %p3467_p2 = scmp.eq.s32.totalorder %s2770_s8, 0 }
  0x19   : > { %3497 = sst [smem:[#allocation24_spill]] %s2770_s8  ;;  %s76_s11 = sadd.s32 1, %s2620_s23 }
  0x1a   : > { %s3498_s10 = scalar_select %p2773_p0, 1, 0 }
  0x1b   : > { %s3552_s9 = smov (%p2773_p0, %s40_s9), 0  ;;  %p83_p3 = scmp.ne.s32.totalorder %s2620_s23, %s2616_s22 }
  0x1c   : > { %3499 = sst [smem:[#allocation25_spill]] %s3552_s9  ;;  %p89_p4 = scmp.ne.s32.totalorder %s2616_s22, %s2612_s21 }
  0x1d   : > { %s73_s12 = ssub.s32 %s2644_s29, %s3552_s9  ;;  %p85_p6 = por %p83_p3, %p3468_p1 }
  0x1e   : > { %p74_p5 = scmp.eq.s32.totalorder %s73_s12, 0  ;;  %p2793_p7 = por %p89_p4, %p3467_p2 }
  0x1f   : > { %p3466_p8 = scmp.lt.s32.totalorder %s2652_s7, 4  ;;  %s3469_s15 = sand.u32 1, %s2652_s7  }
  0x20   : > { %s3500_s13 = scalar_select %p2793_p7, 1, 0 }
  0x21   : > { %s2799_s14 = scalar_select %p74_p5, %s2620_s23, %s76_s11  }
  0x22   : > { %3501 = sst [smem:[#allocation26_spill]] %s3500_s13  ;;  %s2803_s16 = sand.u32 1, %s2620_s23  }
  0x23   : > { %3502 = sst [smem:[#allocation27_spill]] %s2799_s14  ;;  %s1877_s17 = sshll.u32 %s2803_s16, 2 }
  0x24   : > { %s1938_s18 = sshll.u32 %s2644_s29, 6  ;;  %s3503_s1 = sld [smem:[#allocation31_spill]] }
  0x25   : > { %s268_s12 = scalar_lea.vmem [#allocation5], %s1877_s17  ;;  %p2816_p9 = pnand %p3466_p8, %p85_p6 }
  0x26   : > { %s276_s9 = sshll.u32 %s268_s12, 4  ;;  %s2824_s19 = scalar_lea.sflag [#allocation6], %s3469_s15  ;;  %s2812_s9 = int_to_ptr.vmem [resolvable:$true] %s276_s9 }
  0x27   : > { %s3504_s11 = scalar_select %p2816_p9, 1, 0 }
  0x28   : > { %p2830_p13 = pneg %p2816_p9 }
  0x2a   : > { %s2810_s21 = scalar_lea.hbm %s3503_s1, %s1938_s18  ;;  %s2343_s14 = scalar_lea.hbm %s3503_s1, 128 }
  0x2b   : > { %s2338_s18 = scalar_lea.hbm %s2810_s21, 64  ;;  %p2344_p5 = scmp.lt.u32.totalorder %s2810_s21, %s3503_s1 }
  0x2c   : > { %p2339_p12 = scmp.ne.s32.totalorder %s2810_s21, %s2338_s18  ;;  %p2345_p6 = scmp.lt.u32.totalorder %s2343_s14, %s2338_s18 }
  0x2d   : > { %p2347_p2 = scmp.lt.u32.totalorder %s2338_s18, %s2810_s21 }
  0x2e   : > { %p2341_p3 = pnand %p2830_p13, %p2339_p12  ;;  %p2346_p8 = por %p2345_p6, %p2344_p5 }
  0x30   : > { %p2342_p4 = pneg %p2341_p3  ;;  %p2348_p1 = por %p2347_p2, %p2346_p8 }
  0x32   : > { %p2349_p10 = pnand %p2348_p1, %p2342_p4 }
  0x34   : > { %2352 = shalt.err (!%p2349_p10)
}
  0x35   : > { %s2353_s15 = scalar_lea.vmem %s2812_s9, 64  ;;  %s2654_s20 = smov [#allocation5]  }
  0x36   : > { %p2354_p12 = scmp.ne.s32.totalorder %s2812_s9, %s2353_s15  ;;  %s2358_s12 = sshll.u32 %s2654_s20, 4  ;;  %s2359_s12 = int_to_ptr.vmem [resolvable:$false] %s2358_s12 }
  0x37   : > { %s2360_s6 = scalar_lea.vmem %s2359_s12, 128  ;;  %p2361_p7 = scmp.lt.s32.totalorder %s2812_s9, %s2359_s12 }
  0x38   : > { %p2356_p3 = pnand %p2354_p12, %p2830_p13  ;;  %p2362_p0 = scmp.lt.s32.totalorder %s2360_s6, %s2353_s15 }
  0x3a   : > { %p2357_p11 = pneg %p2356_p3  ;;  %p2363_p5 = por %p2362_p0, %p2361_p7 }
  0x3c   : > { %p2364_p6 = pnand %p2363_p5, %p2357_p11 }
  0x3e   : > { %2367 = shalt.err (!%p2364_p6)
}
  0x3f   : > { %2151 = dma.hbm_to_vmem [thread:$0]  (!%p2816_p9), %s2810_s21, 64, %s2812_s9, %s2824_s19  }
  0x40   : > { %p3506_p1 = scmp.lt.s32.totalorder %s2652_s7, 5  ;;  %p3507_p2 = scmp.ge.s32.totalorder %s2652_s7, 1 }
  0x41   : > { %s2863_s14 = sshll.u32 %s2803_s16, 4  ;;  %s2866_s15 = sshll.u32 %s2644_s29, 8 }
  0x42   : > { %p2858_p8 = pnand %p3507_p2, %p3506_p1  ;;  %s3509_s3 = sld [smem:[#allocation32_spill]] }
  0x43   : > { %s308_s9 = scalar_lea.vmem [#allocation8], %s2863_s14  ;;  %s3510_s6 = sand.u32 1, %s2652_s7  }
  0x44   : > { %s3508_s23 = scalar_select %p2858_p8, 1, 0 }
  0x45   : > { %s315_s21 = sshll.u32 %s308_s9, 4  ;;  %s2879_s1 = scalar_lea.sflag [#allocation9], %s3510_s6  ;;  %s2875_s21 = int_to_ptr.vmem [resolvable:$true] %s315_s21 }
  0x48   : > { %s2872_s12 = scalar_lea.hbm %s3509_s3, %s2866_s15  ;;  %s2373_s20 = scalar_lea.hbm %s3509_s3, 512 }
  0x49   : > { %s2368_s28 = scalar_lea.hbm %s2872_s12, 256  ;;  %p2374_p11 = scmp.lt.u32.totalorder %s2872_s12, %s3509_s3 }
  0x4a   : > { %p2369_p0 = scmp.ne.s32.totalorder %s2872_s12, %s2368_s28  ;;  %p2375_p4 = scmp.lt.u32.totalorder %s2373_s20, %s2368_s28 }
  0x4b   : > { %p2377_p3 = scmp.lt.u32.totalorder %s2368_s28, %s2872_s12 }
  0x4c   : > { %p2371_p7 = pnand %p2369_p0, %p2830_p13  ;;  %p2376_p12 = por %p2375_p4, %p2374_p11 }
  0x4e   : > { %p2372_p10 = pneg %p2371_p7  ;;  %p2378_p5 = por %p2377_p3, %p2376_p12 }
  0x50   : > { %p2379_p6 = pnand %p2378_p5, %p2372_p10 }
  0x52   : > { %2382 = shalt.err (!%p2379_p6)
}
  0x53   : > { %s2383_s9 = scalar_lea.vmem %s2875_s21, 256  ;;  %s2655_s27 = smov [#allocation8]  }
  0x54   : > { %p2384_p1 = scmp.ne.s32.totalorder %s2875_s21, %s2383_s9  ;;  %s2388_s6 = sshll.u32 %s2655_s27, 4  ;;  %s2389_s6 = int_to_ptr.vmem [resolvable:$false] %s2388_s6 }
  0x55   : > { %s2390_s22 = scalar_lea.vmem %s2389_s6, 512  ;;  %p2391_p7 = scmp.lt.s32.totalorder %s2875_s21, %s2389_s6 }
  0x56   : > { %p2386_p2 = pnand %p2384_p1, %p2830_p13  ;;  %p2392_p8 = scmp.lt.s32.totalorder %s2390_s22, %s2383_s9 }
  0x58   : > { %p2387_p0 = pneg %p2386_p2  ;;  %p2393_p11 = por %p2392_p8, %p2391_p7 }
  0x5a   : > { %p2394_p4 = pnand %p2393_p11, %p2387_p0 }
  0x5c   : > { %2397 = shalt.err (!%p2394_p4)
}
  0x5d   : > { %s3475_s28 = smov 64   ;;  %s3477_s13 = smov 4  }
  0x5e   : > { %2157 = dma.hbm_to_vmem [thread:$0]  (!%p2816_p9), %s2872_s12, 256, %s2875_s21, %s2879_s1, %s3475_s28, %s3475_s28, %s3477_s13  }
  0x5f   : > { %s1871_s18 = sadd.s32 4294967294, %s2652_s7   ;;  %s43_s20 = sadd.s32 1, %s2648_s30 }
  0x60   : > { %s50_s9 = sadd.s32 1, %s2632_s26  ;;  %p3511_p8 = scmp.ne.s32.totalorder %s3498_s10, 0 }
  0x61   : > { %p57_p10 = scmp.ne.s32.totalorder %s2632_s26, %s2628_s25  ;;  %p63_p12 = scmp.ne.s32.totalorder %s2628_s25, %s2624_s24 }
  0x62   : > { %s3554_s20 = smov (!%p3511_p8, %s43_s20), %s2648_s30  ;;  %p217_p5 = scmp.eq.s32.totalorder %s2770_s8, 3 }
  0x63   : > { %p45_p3 = scmp.ge.s32.totalorder %s3554_s20, 2  ;;  %p3512_p6 = scmp.eq.s32.totalorder %s2652_s7, 0 }
  0x64   : > { %p3514_p2 = scmp.eq.s32.totalorder %s2770_s8, 0  ;;  %p2931_p7 = por %p217_p5, %p57_p10 }
  0x65   : > { %p2919_p1 = por %p3512_p6, %p57_p10  ;;  %s3556_s20 = smov (%p45_p3, %s3554_s20), 0 }
  0x66   : > { %p2925_p0 = por %p3514_p2, %p63_p12  ;;  %3517 = sst [smem:[#allocation29_spill]] %s3556_s20 }
  0x67   : > { %s3518_s10 = scalar_select %p2931_p7, 1, 0 }
  0x68   : > { %s3515_s12 = scalar_select %p2925_p0, 1, 0 }
  0x69   : > { %p223_p11 = scmp.eq.s32.totalorder %s1871_s18, 3  ;;  %s47_s21 = ssub.s32 %s2648_s30, %s3556_s20 }
  0x6a   : > { %3516 = sst [smem:[#allocation28_spill]] %s3515_s12  ;;  %s243_s6 = sand.u32 1, %s2632_s26  }
  0x6b   : > { %p48_p4 = scmp.eq.s32.totalorder %s47_s21, 0  ;;  %p2938_p8 = por %p223_p11, %p63_p12 }
  0x6c   : > { %s1874_s28 = sshll.u32 %s243_s6, 4  ;;  %s1937_s3 = sshll.u32 %s2648_s30, 8 }
  0x6d   : > { %s3519_s22 = scalar_select %p2938_p8, 1, 0 }
  0x6e   : > { %s2943_s13 = scalar_select %p48_p4, %s2632_s26, %s50_s9  }
  0x6f   : > { %s3520_s0 = sld [smem:[#allocation30_spill]]  ;;  %s247_s18 = scalar_lea.vmem [#allocation2], %s1874_s28 }
  0x70   : > { %s254_s20 = sshll.u32 %s247_s18, 4  ;;  %p3521_p10 = scmp.lt.s32.totalorder %s2652_s7, 4  ;;  %s2951_s20 = int_to_ptr.vmem [resolvable:$true] %s254_s20 }
  0x71   : > { %s2961_s9 = scalar_lea.sflag [#allocation3], %s243_s6 }
  0x72   : > { %p2957_p12 = pnand %p3521_p10, %p2919_p1 }
  0x74   : > { %p2400_p5 = pneg %p2957_p12 }
  0x75   : > { %s2949_s12 = scalar_lea.hbm %s3520_s0, %s1937_s3  ;;  %s2403_s28 = scalar_lea.hbm %s3520_s0, 512 }
  0x76   : > { %s2398_s3 = scalar_lea.hbm %s2949_s12, 256  ;;  %p2404_p1 = scmp.lt.u32.totalorder %s2949_s12, %s3520_s0 }
  0x77   : > { %p2399_p3 = scmp.ne.s32.totalorder %s2949_s12, %s2398_s3  ;;  %p2405_p11 = scmp.lt.u32.totalorder %s2403_s28, %s2398_s3 }
  0x78   : > { %p2407_p10 = scmp.lt.u32.totalorder %s2398_s3, %s2949_s12 }
  0x79   : > { %p2401_p6 = pnand %p2400_p5, %p2399_p3  ;;  %p2406_p4 = por %p2405_p11, %p2404_p1 }
  0x7b   : > { %p2402_p2 = pneg %p2401_p6  ;;  %p2408_p8 = por %p2407_p10, %p2406_p4 }
  0x7d   : > { %p2409_p7 = pnand %p2408_p8, %p2402_p2 }
  0x7f   : > { %2412 = shalt.err (!%p2409_p7)
}
  0x80   : > { %s2413_s6 = scalar_lea.vmem %s2951_s20, 256  ;;  %s2658_s24 = smov [#allocation2]  }
  0x81   : > { %p2414_p3 = scmp.ne.s32.totalorder %s2951_s20, %s2413_s6  ;;  %s2418_s8 = sshll.u32 %s2658_s24, 4  ;;  %s2419_s8 = int_to_ptr.vmem [resolvable:$false] %s2418_s8 }
  0x82   : > { %s2420_s27 = scalar_lea.vmem %s2419_s8, 512  ;;  %p2421_p9 = scmp.lt.s32.totalorder %s2951_s20, %s2419_s8 }
  0x83   : > { %p2416_p6 = pnand %p2414_p3, %p2400_p5  ;;  %p2422_p1 = scmp.lt.s32.totalorder %s2420_s27, %s2413_s6 }
  0x85   : > { %p2417_p0 = pneg %p2416_p6  ;;  %p2423_p11 = por %p2422_p1, %p2421_p9 }
  0x87   : > { %p2424_p4 = pnand %p2423_p11, %p2417_p0 }
  0x89   : > { %2427 = shalt.err (!%p2424_p4)
}
  0x8a   : > { %s2659_s3 = smov 128   ;;  %s2660_s28 = smov 8  }
  0x8b   : > { %2148 = dma.hbm_to_vmem [thread:$0]  (!%p2957_p12), %s2949_s12, 256, %s2951_s20, %s2961_s9, %s2659_s3, %s2659_s3, %s2660_s28  }
  0x8c   : > { %s2993_s0 = scalar_lea.hbm %s3458_s2, %s2866_s15  ;;  %s287_s6 = scalar_lea.vmem [#allocation7], %s2863_s14 }
  0x8d   : > { %s294_s8 = sshll.u32 %s287_s6, 4  ;;  %s2428_s27 = scalar_lea.hbm %s2993_s0, 256  ;;  %s2996_s8 = int_to_ptr.vmem [resolvable:$true] %s294_s8 }
  0x8e   : > { %p2429_p9 = scmp.ne.s32.totalorder %s2993_s0, %s2428_s27  ;;  %s2433_s12 = scalar_lea.hbm %s3458_s2, 512 }
  0x8f   : > { %p2434_p8 = scmp.lt.u32.totalorder %s2993_s0, %s3458_s2  ;;  %p2435_p12 = scmp.lt.u32.totalorder %s2433_s12, %s2428_s27 }
  0x90   : > { %p2431_p0 = pnand %p2429_p9, %p2830_p13  ;;  %p2437_p2 = scmp.lt.u32.totalorder %s2428_s27, %s2993_s0 }
  0x91   : > { %p2436_p5 = por %p2435_p12, %p2434_p8 }
  0x92   : > { %p2432_p7 = pneg %p2431_p0 }
  0x93   : > { %p2438_p10 = por %p2437_p2, %p2436_p5 }
  0x95   : > { %p2439_p3 = pnand %p2438_p10, %p2432_p7 }
  0x97   : > { %2442 = shalt.err (!%p2439_p3)
}
  0x98   : > { %s2443_s28 = scalar_lea.vmem %s2996_s8, 256  ;;  %s2661_s18 = smov [#allocation7]  }
  0x99   : > { %p2444_p6 = scmp.ne.s32.totalorder %s2996_s8, %s2443_s28  ;;  %s2448_s24 = sshll.u32 %s2661_s18, 4  ;;  %s2449_s24 = int_to_ptr.vmem [resolvable:$false] %s2448_s24 }
  0x9a   : > { %s2450_s6 = scalar_lea.vmem %s2449_s24, 512  ;;  %p2451_p4 = scmp.lt.s32.totalorder %s2996_s8, %s2449_s24 }
  0x9b   : > { %p2446_p1 = pnand %p2444_p6, %p2830_p13  ;;  %p2452_p9 = scmp.lt.s32.totalorder %s2450_s6, %s2443_s28 }
  0x9d   : > { %p2447_p11 = pneg %p2446_p1  ;;  %p2453_p0 = por %p2452_p9, %p2451_p4 }
  0x9f   : > { %p2454_p8 = pnand %p2453_p0, %p2447_p11 }
  0xa1   : > { %2457 = shalt.err (!%p2454_p8)
}
  0xa2   : > { %p3523_p7 = scmp.ne.s32.totalorder %s3504_s11, 0  ;;  %s3524_s27 = smov 4  }
  0xa3   : > { %s3525_s21 = smov 64   ;;  %s3027_s9 = scalar_lea.hbm %s3460_s4, %s2866_s15 }
  0xa4   : > { %2154 = dma.hbm_to_vmem [thread:$0]  (!%p3523_p7), %s2993_s0, 256, %s2996_s8, %s2824_s19, %s3525_s21, %s3525_s21, %s3524_s27  }
  0xa5   : > { %s329_s3 = scalar_lea.vmem [#allocation10], %s2863_s14  ;;  %s2458_s18 = scalar_lea.hbm %s3027_s9, 256 }
  0xa6   : > { %s336_s28 = sshll.u32 %s329_s3, 4  ;;  %p2459_p12 = scmp.ne.s32.totalorder %s3027_s9, %s2458_s18  ;;  %s3030_s28 = int_to_ptr.vmem [resolvable:$true] %s336_s28 }
  0xa7   : > { %s2463_s19 = scalar_lea.hbm %s3460_s4, 512  ;;  %p2464_p10 = scmp.lt.u32.totalorder %s3027_s9, %s3460_s4 }
  0xa8   : > { %p2461_p5 = pnand %p2459_p12, %p2830_p13  ;;  %p2465_p3 = scmp.lt.u32.totalorder %s2463_s19, %s2458_s18 }
  0xa9   : > { %p2467_p1 = scmp.lt.u32.totalorder %s2458_s18, %s3027_s9 }
  0xaa   : > { %p2462_p2 = pneg %p2461_p5  ;;  %p2466_p6 = por %p2465_p3, %p2464_p10 }
  0xac   : > { %p2468_p11 = por %p2467_p1, %p2466_p6 }
  0xae   : > { %p2469_p4 = pnand %p2468_p11, %p2462_p2 }
  0xb0   : > { %2472 = shalt.err (!%p2469_p4)
}
  0xb1   : > { %s2473_s14 = scalar_lea.vmem %s3030_s28, 256  ;;  %s2662_s6 = smov [#allocation10]  }
  0xb2   : > { %p2474_p9 = scmp.ne.s32.totalorder %s3030_s28, %s2473_s14  ;;  %s2478_s20 = sshll.u32 %s2662_s6, 4  ;;  %s2479_s20 = int_to_ptr.vmem [resolvable:$false] %s2478_s20 }
  0xb3   : > { %s2480_s12 = scalar_lea.vmem %s2479_s20, 512  ;;  %p2481_p12 = scmp.lt.s32.totalorder %s3030_s28, %s2479_s20 }
  0xb4   : > { %p2476_p0 = pnand %p2474_p9, %p2830_p13  ;;  %p2482_p5 = scmp.lt.s32.totalorder %s2480_s12, %s2473_s14 }
  0xb6   : > { %p2477_p8 = pneg %p2476_p0  ;;  %p2483_p10 = por %p2482_p5, %p2481_p12 }
  0xb8   : > { %p2484_p3 = pnand %p2483_p10, %p2477_p8 }
  0xba   : > { %2487 = shalt.err (!%p2484_p3)
}
  0xbb   : > { %2160 = dma.hbm_to_vmem [thread:$0]  (!%p3523_p7), %s3027_s9, 256, %s3030_s28, %s2879_s1, %s3525_s21, %s3525_s21, %s3524_s27  }
  0xbc   : > { %s1889_s3 = sshll.u32 %s2803_s16, 6  ;;  %s1942_s18 = sshll.u32 %s2644_s29, 10 }
  0xbd   : > { %s3062_s19 = scalar_lea.hbm %s3461_s5, %s1942_s18  ;;  %s350_s8 = scalar_lea.vmem [#allocation11], %s1889_s3 }
  0xbe   : > { %s357_s15 = sshll.u32 %s350_s8, 4  ;;  %s347_s14 = scalar_lea.sflag [#allocation12], %s2803_s16  ;;  %s3064_s15 = int_to_ptr.vmem [resolvable:$true] %s357_s15 }
  0xbf   : > { %s2488_s6 = scalar_lea.hbm %s3062_s19, 1024  ;;  %s2493_s28 = scalar_lea.hbm %s3461_s5, 2048 }
  0xc0   : > { %p2489_p2 = scmp.ne.s32.totalorder %s3062_s19, %s2488_s6  ;;  %p2494_p11 = scmp.lt.u32.totalorder %s3062_s19, %s3461_s5 }
  0xc1   : > { %p2495_p4 = scmp.lt.u32.totalorder %s2493_s28, %s2488_s6  ;;  %p2497_p0 = scmp.lt.u32.totalorder %s2488_s6, %s3062_s19 }
  0xc2   : > { %p2491_p6 = pnand %p2489_p2, %p2830_p13 }
  0xc3   : > { %p2496_p9 = por %p2495_p4, %p2494_p11 }
  0xc4   : > { %p2492_p1 = pneg %p2491_p6 }
  0xc5   : > { %p2498_p8 = por %p2497_p0, %p2496_p9 }
  0xc7   : > { %p2499_p12 = pnand %p2498_p8, %p2492_p1 }
  0xc9   : > { %2502 = shalt.err (!%p2499_p12)
}
  0xca   : > { %s2503_s3 = scalar_lea.vmem %s3064_s15, 1024  ;;  %s2663_s18 = smov [#allocation11]  }
  0xcb   : > { %p2504_p5 = scmp.ne.s32.totalorder %s3064_s15, %s2503_s3  ;;  %s2508_s24 = sshll.u32 %s2663_s18, 4  ;;  %s2509_s24 = int_to_ptr.vmem [resolvable:$false] %s2508_s24 }
  0xcc   : > { %s2510_s0 = scalar_lea.vmem %s2509_s24, 2048  ;;  %p2511_p2 = scmp.lt.s32.totalorder %s3064_s15, %s2509_s24 }
  0xcd   : > { %p2506_p10 = pnand %p2504_p5, %p2830_p13  ;;  %p2512_p6 = scmp.lt.s32.totalorder %s2510_s0, %s2503_s3 }
  0xcf   : > { %p2507_p3 = pneg %p2506_p10  ;;  %p2513_p11 = por %p2512_p6, %p2511_p2 }
  0xd1   : > { %p2514_p4 = pnand %p2513_p11, %p2507_p3 }
  0xd3   : > { %2517 = shalt.err (!%p2514_p4)
}
  0xd4   : > { %2163 = dma.hbm_to_vmem [thread:$0]  (!%p3523_p7), %s3062_s19, 1024, %s3064_s15, %s347_s14, %s3525_s21, %s3525_s21, %s3524_s27  }
  0xd5   : > { %p3526_p13 = scmp.ne.s32.totalorder %s3508_s23, 0 }
  0xd6   : > { %s3527_s17 = sld [smem:[#allocation28_spill]] (!%p3526_p13)  ;;  %s3096_s8 = sand.u32 (!%p3526_p13), 1, %s2628_s25  }
  0xd7   : > { %369 = sbr.rel (%p3526_p13) target bundleno = 3541 (0xdd5), region = 44  ;;  %s1893_s6 = sshll.u32 (!%p3526_p13), %s3096_s8, 4 }
  0xd8   : > { %s372_s1 = scalar_lea.sflag (!%p3526_p13), [#allocation3], %s3096_s8  ;;  %s375_s11 = scalar_lea.vmem (!%p3526_p13), [#allocation2], %s1893_s6 }
  0xdc   : > { %p3528_p1 = scmp.ne.s32.totalorder (!%p3526_p13), %s3527_s17, 0 }
  0xde   : > { %2591 = dma.done.wait (%p3528_p1), %s372_s1, 256  }
  0xdf   : > { %2593 = vsyncadd (%p3528_p1), %s372_s1, 4294967040  ;;  %s3529_s16 = sld [smem:[#allocation24_spill]]  ;;  %s3531_s27 = sld [smem:[#allocation26_spill]] }
  0xe0   : > { %s3530_s9 = sld [smem:[#allocation19_spill]] }
  0xe5   : > { %s380_s21 = sand.u32 1, %s3529_s16   ;;  %p3532_p7 = scmp.ne.s32.totalorder %s3531_s27, 0 }
  0xe6   : > { %s382_s23 = sand.u32 1, %s3530_s9   ;;  %s381_s15 = scalar_lea.sflag [#allocation6], %s380_s21 }
  0xe7   : > { %s1894_s19 = sshll.u32 %s382_s23, 2 }
  0xe8   : > { %s3106_s14 = scalar_lea.vmem [#allocation5], %s1894_s19 }
  0xe9   : > { %2595 = dma.done.wait (%p3532_p7), %s381_s15, 320  }
  0xea   : > { %2597 = vsyncadd (%p3532_p7), %s381_s15, 4294966976  ;;  %s3112_s28 = sshll.u32 %s382_s23, 4  ;;  %s399_s12 = scalar_lea.sflag [#allocation9], %s380_s21 }
  0xeb   : > { %s393_s20 = scalar_lea.vmem [#allocation7], %s3112_s28  ;;  %s3116_s3 = scalar_lea.vmem [#allocation8], %s3112_s28 }
  0xec   : > { %2599 = dma.done.wait (%p3532_p7), %s399_s12, 512  }
  0xed   : > { %2601 = vsyncadd (%p3532_p7), %s399_s12, 4294966784  ;;  %s1898_s18 = sshll.u32 %s382_s23, 6  ;;  %s411_s24 = scalar_lea.vmem [#allocation10], %s3112_s28 }
  0xee   : > { %s417_s0 = scalar_lea.sflag [#allocation12], %s382_s23  ;;  %s3123_s17 = scalar_lea.vmem [#allocation11], %s1898_s18 }
  0xef   : > { %2603 = dma.done.wait (%p3532_p7), %s417_s0, 1024  }
  0xf0   : > { %2605 = vsyncadd (%p3532_p7), %s417_s0, 4294966272  ;;  %s3129_s1 = scalar_lea.vmem [#allocation13], %s1893_s6  ;;  %s3533_s16 = sld [smem:[#allocation22_spill]] }
  0xf6   : > { %p1900_p9 = scmp.ne.s32.totalorder %s3533_s16, 0 }
  0xf7   : > { %v483_v0 = vld [vmem:[%s375_s11] sm:$0xff] (!%p1900_p9)  ;;  %vm485_vm0 = vcmask (!%p1900_p9), 261120   ;;  %v484_v1 = vld [vmem:[%s375_s11 + $0x8] sm:$0xff] (!%p1900_p9) }
  0xf8   : > { %482 = sbr.rel (%p1900_p9) target bundleno = 255 (0xff), region = 72  ;;  %486 = vst.msk [vmem:[%s3129_s1] sm:$0xff] (!%p1900_p9), %vm485_vm0, %v483_v0  ;;  %487 = vst.msk [vmem:[%s3129_s1 + $0x8] sm:$0xff] (!%p1900_p9), %vm485_vm0, %v484_v1 }
  0xff PF: > { %v3135_v2 = vld [vmem:[%s3129_s1] sm:$0xff]  ;;  %vm498_vm1 = vcmask 261120   ;;  %v3138_v3 = vld [vmem:[%s3129_s1 + $0x8] sm:$0xff]  ;;  %s2664_s6 = smov 96   ;;  %v2665_v18 = vmov 0.0   ;;  %vm2666_vm2 = vmmov 0   ;;  %v541_v20 = vlaneseq }
 0x100   : > { %v499_v4 = vsel %vm498_vm1, %v3135_v2, 0.0  ;;  %v502_v5 = vsel %vm498_vm1, %v3138_v3, 0.0  ;;  %v3145_v6 = vld [vmem:[%s3106_s14] ss:$0 sm:$0xff]  ;;  %v2278_v17 = vld [vmem:[%s393_s20] sm:$0xff]   ;;  %1995 = vmatprep.subr.bf16.mxu0 %v2665_v18  ;;  %2003 = vmatprep.subr.bf16.mxu1 %v2665_v18  ;;  %s2667_s11 = smov 64  }
 0x101   : > { %500 = vadd.xlane.f32.xlu0 %v499_v4  ;;  %1996 = vmatpush3.bf16.msra.mxu0 %v2278_v17  ;;  %v2279_v19 = vld [vmem:[%s393_s20 + $0x8] sm:$0xff]   ;;  %v3165_v21 = vshrl.u32 %v541_v20, 7  ;;  %vm565_vm3 = vcmask 523264   ;;  %s2668_s9 = smov 88   ;;  %s2669_s27 = smov 120   ;;  %vm623_vm4 = vcmask 64512  }
 0x102   : > { %1997 = vmatprep.subr.bf16.mxu0 %v2665_v18  ;;  %1999 = vmatprep.mubr.msk.bf16.mxu0 %vm2666_vm2, %v2665_v18  ;;  %v492_v22 = vld [vmem:[%s3106_s14 + $0x1] sm:$0x3]  ;;  %v3198_v58 = vand.u32 127, %v541_v20  ;;  %vm675_vm6 = vcmask 130048   ;;  %s2670_s21 = smov 56   ;;  %s2671_s23 = smov 112  }
 0x103   : > { %2005 = vmatprep.mubr.msk.bf16.mxu1 %vm2666_vm2, %v2665_v18  ;;  %v543_v23 = vsub.s32 0, %v3165_v21  ;;  %v547_v24 = vsub.s32 1, %v3165_v21  ;;  %v3201_v59 = vadd.s32 8, %v3165_v21  ;;  %s2672_s19 = smov 80   ;;  %vm878_vm8 = vcmask 1043456   ;;  %s2673_s15 = smov 72  }
 0x104   : > { %vm618_vm5 = vcmp.ge.s32.totalorder %v3165_v21, %v3198_v58  ;;  %s2674_s20 = smov 48   ;;  %s2675_s12 = smov 104   ;;  %vm1402_vm9 = vcmask 785408  }
 0x105   : > { %503 = vadd.xlane.f32.xlu0 %v502_v5  ;;  %1998 = vmatpush3.bf16.msra.mxu0 %v2279_v19  ;;  %v544_v25 = vrot.slane %v492_v22, %v543_v23  ;;  %v548_v26 = vrot.slane %v492_v22, %v547_v24  ;;  %vm619_vm7 = vcmp.ge.s32.totalorder %v3201_v59, %v3198_v58  ;;  %s2676_s18 = smov 40   ;;  %s3535_s16 = sld [smem:[#allocation33_spill]] }
 0x106   : > { %2009 = vmatprep.subr.bf16.mxu0 %v2665_v18  ;;  %p3536_p8 = scmp.ne.s32.totalorder %s3518_s10, 0 }
 0x11b   : > { %534 = vrot.lane.b32.xlu0 %v3145_v6, %s2664_s6 }
 0x18e   : > { %v501_v7 = vpop.xlane.xlu0 %500 }
 0x18f   : > { %v506_v8 = vmul.f32 0.03125, %v501_v7 }
 0x191   : > { %v508_v9 = vsub.f32 %v3135_v2, %v506_v8 }
 0x192   : > { %v504_v10 = vpop.xlane.xlu0 %503 }
 0x193   : > { %v507_v11 = vmul.f32 0.03125, %v504_v10  ;;  %v510_v12 = vmul.f32 %v508_v9, %v508_v9 }
 0x195   : > { %v509_v13 = vsub.f32 %v3138_v3, %v507_v11  ;;  %v512_v14 = vsel %vm498_vm1, %v510_v12, 0.0 }
 0x196   : > { %513 = vadd.xlane.f32.xlu1 %v512_v14  ;;  %v535_v38 = vpop.permute.xlu0 %534 }
 0x197   : > { %v511_v15 = vmul.f32 %v509_v13, %v509_v13 }
 0x199   : > { %v515_v16 = vsel %vm498_vm1, %v511_v15, 0.0 }
 0x19a   : > { %516 = vadd.xlane.f32.xlu1 %v515_v16 }
 0x1ab   : > { %561 = vrot.lane.b32.xlu1 %v544_v25, %s2667_s11 }
 0x1af   : > { %563 = vrot.lane.b32.xlu1 %v548_v26, %s2667_s11 }
 0x223   : > { %v514_v27 = vpop.xlane.xlu1 %513 }
 0x224   : > { %v518_v28 = vmul.f32 0.03125, %v514_v27 }
 0x226   : > { %v520_v29 = vadd.f32 1e-05, %v518_v28 }
 0x227   : > { %v517_v30 = vpop.xlane.xlu1 %516 }
 0x228   : > { %2290 = vrsqrt.f32 %v520_v29  ;;  %v519_v31 = vmul.f32 0.03125, %v517_v30 }
 0x22a   : > { %v521_v32 = vadd.f32 1e-05, %v519_v31 }
 0x22b   : > { %v562_v43 = vpop.permute.xlu1 %561 }
 0x22c   : > { %2292 = vrsqrt.f32 %v521_v32 }
 0x22f   : > { %v564_v44 = vpop.permute.xlu1 %563 }
 0x230   : > { %v566_v47 = vsel %vm565_vm3, %v562_v43, %v564_v44 }
 0x232   : > { %v2291_v33 = vpop.eup %2290 }
 0x233   : > { %v524_v34 = vmul.f32 %v2291_v33, %v508_v9 }
 0x235   : > { %v532_v37 = vmul.f32 %v3145_v6, %v524_v34 }
 0x236   : > { %v2293_v35 = vpop.eup %2292 }
 0x237   : > { %v525_v36 = vmul.f32 %v2293_v35, %v509_v13  ;;  %v537_v40 = vadd.f32 %v535_v38, %v532_v37 }
 0x239   : > { %v533_v39 = vmul.f32 %v3145_v6, %v525_v36 }
 0x23b   : > { %v538_v41 = vadd.f32 %v535_v38, %v533_v39 }
 0x23d   : > { %v539_v42 = vpack.c.bf16 %v538_v41, %v537_v40 }
 0x23f   : > { %2000 = vmatmul.mubr.msk.bf16.vlgmr.msra.gmra.mrb[0].mxu0 %vm498_vm1, %v539_v42 }
 0x240   : > { %2011 = vmatprep.mubr.msk.bf16.mxu0 %vm2666_vm2, %v2665_v18 }
 0x312   : > { %v605_v45 = vpop.f32.mrb[0].mxu0 }
 0x313   : > { %v2001_v46 = vpop.f32.mrb[1].mxu0  ;;  %v606_v49 = vadd.f32 %v605_v45, %v566_v47 }
 0x314   : > { %v608_v48 = vpop.f32.mrb[2].mxu0 }
 0x315   : > { %v609_v50 = vadd.f32 %v608_v48, %v566_v47  ;;  %v2002_v51 = vpop.f32.mrb[3].mxu0  ;;  %v747_v47 = vld [vmem:[%s3116_s3] sm:$0xf] }
 0x316   : > { %v927_v48 = vsel %vm878_vm8, %v747_v47, 0 }
 0x317   : > { %v3181_v52 = vpack.c.bf16 %v609_v50, %v606_v49  ;;  %v874_v49 = vld [vmem:[%s3116_s3 + $0x4] sm:$0xf] }
 0x318   : > { %v880_v50 = vsel %vm878_vm8, %v874_v49, 0 }
 0x319   : > { %750 = vrot.lane.b32.xlu0 %v3181_v52, %s2668_s9  ;;  %621 = vrot.lane.b32.xlu1 %v3181_v52, %s2664_s6 }
 0x31d   : > { %748 = vrot.lane.b32.xlu1 %v3181_v52, %s2669_s27  ;;  %s2678_s27 = smov [#allocation13]  }
 0x38b   : > { %v622_v53 = vpop.permute.xlu1 %621  ;;  %v751_v55 = vpop.permute.xlu0 %750 }
 0x38c   : > { %v628_v54 = vsel %vm623_vm4, %v622_v53, 0  ;;  %v756_v56 = vsel %vm623_vm4, %v751_v55, 0 }
 0x38d   : > { %2004 = vmatpush3.bf16.xpose.msra.mxu1 %v628_v54 }
 0x38e   : > { %2015 = vmatprep.subr.bf16.mxu1 %v2665_v18 }
 0x38f   : > { %v749_v57 = vpop.permute.xlu1 %748 }
 0x394   : > { %2006 = vmatmul.mubr.msk.bf16.vlgmr.msra.gmra.mrb[0].mxu1 %vm623_vm4, %v3181_v52 }
 0x395   : > { %2016 = vmatpush3.bf16.xpose.msra.mxu1 %v756_v56  ;;  %2017 = vmatprep.mubr.msk.bf16.mxu1 %vm2666_vm2, %v2665_v18 }
 0x396   : > { %2027 = vmatprep.subr.bf16.mxu1 %v2665_v18 }
 0x39c   : > { %2018 = vmatmul.mubr.msk.bf16.vlgmr.msra.gmra.mrb[4].mxu1 %vm623_vm4, %v749_v57 }
 0x39d   : > { %2029 = vmatprep.mubr.msk.bf16.mxu1 %vm2666_vm2, %v2665_v18  ;;  %2028 = vmatpush3.bf16.msra.mxu1 %v880_v50 }
 0x39e   : > { %2039 = vmatprep.subr.bf16.mxu1 %v2665_v18 }
 0x467   : > { %v664_v60 = vpop.f32.mrb[0].mxu1 }
 0x468   : > { %v671_v61 = vmul.f32 0.35355338, %v664_v60  ;;  %v2007_v62 = vpop.f32.mrb[1].mxu1 }
 0x469   : > { %v667_v63 = vpop.f32.mrb[2].mxu1 }
 0x46a   : > { %v672_v0 = vmul.f32 0.35355338, %v667_v63  ;;  %v2008_v1 = vpop.f32.mrb[3].mxu1  ;;  %v673_v4 = vsel %vm618_vm5, %v671_v61, -1e+30 }
 0x46b   : > { %v676_v5 = vsel %vm675_vm6, %v673_v4, -inf }
 0x46c   : > { %677 = vmax.xlane.f32.xlu0 %v676_v5  ;;  %v674_v7 = vsel %vm619_vm7, %v672_v0, -1e+30 }
 0x46d   : > { %v679_v8 = vsel %vm675_vm6, %v674_v7, -inf }
 0x46e   : > { %680 = vmax.xlane.f32.xlu1 %v679_v8 }
 0x46f   : > { %v792_v9 = vpop.f32.mrb[4].mxu1 }
 0x470   : > { %v799_v10 = vmul.f32 0.35355338, %v792_v9  ;;  %v2019_v11 = vpop.f32.mrb[5].mxu1 }
 0x471   : > { %v795_v12 = vpop.f32.mrb[6].mxu1 }
 0x472   : > { %v800_v13 = vmul.f32 0.35355338, %v795_v12  ;;  %v2020_v14 = vpop.f32.mrb[7].mxu1  ;;  %v801_v15 = vsel %vm618_vm5, %v799_v10, -1e+30 }
 0x473   : > { %v803_v16 = vsel %vm675_vm6, %v801_v15, -inf }
 0x474   : > { %804 = vmax.xlane.f32.xlu0 %v803_v16  ;;  %v802_v17 = vsel %vm619_vm7, %v800_v13, -1e+30 }
 0x475   : > { %v806_v19 = vsel %vm675_vm6, %v802_v17, -inf }
 0x478   : > { %807 = vmax.xlane.f32.xlu0 %v806_v19 }
 0x47f   : > { %822 = vrot.lane.b32.xlu1 %v3181_v52, %s2670_s21  ;;  %s2522_s21 = sshll.u32 %s2678_s27, 4  ;;  %s2523_s21 = int_to_ptr.vmem [resolvable:$false] %s2522_s21 }
 0x48e   : > { %695 = vrot.lane.b32.xlu0 %v3181_v52, %s2667_s11 }
 0x4f9   : > { %v678_v20 = vpop.xlane.xlu0 %677 }
 0x4fa   : > { %v682_v22 = vsub.f32 %v673_v4, %v678_v20 }
 0x4fb   : > { %v681_v25 = vpop.xlane.xlu1 %680 }
 0x4fc   : > { %v684_v26 = vmul.f32 1.442695, %v682_v22  ;;  %v683_v27 = vsub.f32 %v674_v7, %v681_v25 }
 0x4fe   : > { %v686_v28 = vmul.f32 1.442695, %v683_v27  ;;  %2294 = vpow2.f32 %v684_v26 }
 0x4ff   : > { %v823_v39 = vpop.permute.xlu1 %822 }
 0x500   : > { %2296 = vpow2.f32 %v686_v28 }
 0x501   : > { %v805_v29 = vpop.xlane.xlu0 %804 }
 0x502   : > { %v809_v30 = vsub.f32 %v801_v15, %v805_v29 }
 0x504   : > { %v811_v31 = vmul.f32 1.442695, %v809_v30 }
 0x505   : > { %v808_v32 = vpop.xlane.xlu0 %807 }
 0x506   : > { %2298 = vpow2.f32 %v811_v31  ;;  %v810_v33 = vsub.f32 %v802_v17, %v808_v32 }
 0x508   : > { %v813_v34 = vmul.f32 1.442695, %v810_v33  ;;  %v2295_v35 = vpop.eup %2294 }
 0x509   : > { %v696_v36 = vpop.permute.xlu0 %695  ;;  %v688_v45 = vsel %vm675_vm6, %v2295_v35, 0.0 }
 0x50a   : > { %v2297_v37 = vpop.eup %2296  ;;  %2300 = vpow2.f32 %v813_v34  ;;  %2010 = vmatpush3.bf16.msra.mxu0 %v696_v36 }
 0x50b   : > { %v694_v38 = vpack.c.bf16 %v2297_v37, %v2295_v35  ;;  %2021 = vmatprep.subr.bf16.mxu0 %v2665_v18  ;;  %v691_v46 = vsel %vm675_vm6, %v2297_v37, 0.0 }
 0x50d   : > { %2012 = vmatmul.mubr.msk.bf16.vlgmr.msra.gmra.mrb[4].mxu0 %vm675_vm6, %v694_v38 }
 0x50e   : > { %2022 = vmatpush3.bf16.msra.mxu0 %v823_v39  ;;  %2023 = vmatprep.mubr.msk.bf16.mxu0 %vm2666_vm2, %v2665_v18 }
 0x50f   : > { %2033 = vmatprep.subr.bf16.mxu0 %v2665_v18 }
 0x510   : > { %v2299_v40 = vpop.eup %2298 }
 0x511   : > { %v815_v41 = vsel %vm675_vm6, %v2299_v40, 0.0 }
 0x512   : > { %816 = vadd.xlane.f32.xlu1 %v815_v41 }
 0x514   : > { %v2301_v42 = vpop.eup %2300 }
 0x515   : > { %v818_v43 = vsel %vm675_vm6, %v2301_v42, 0.0  ;;  %v821_v44 = vpack.c.bf16 %v2301_v42, %v2299_v40 }
 0x516   : > { %819 = vadd.xlane.f32.xlu0 %v818_v43 }
 0x517   : > { %2024 = vmatmul.mubr.msk.bf16.vlgmr.msra.gmra.mrb[8].mxu0 %vm675_vm6, %v821_v44 }
 0x518   : > { %2035 = vmatprep.mubr.msk.bf16.mxu0 %vm2666_vm2, %v2665_v18  ;;  %2034 = vmatpush3.bf16.msra.mxu0 %v927_v48 }
 0x519   : > { %2045 = vmatprep.subr.bf16.mxu0 %v2665_v18 }
 0x523   : > { %970 = vrot.lane.b32.xlu1 %v3181_v52, %s2671_s23  ;;  %s2524_s23 = scalar_lea.vmem %s2523_s21, 512 }
 0x52c   : > { %972 = vrot.lane.b32.xlu0 %v3181_v52, %s2672_s19 }
 0x547   : > { %689 = vadd.xlane.f32.xlu1 %v688_v45 }
 0x54b   : > { %692 = vadd.xlane.f32.xlu0 %v691_v46 }
 0x59f   : > { %v817_v51 = vpop.xlane.xlu1 %816 }
 0x5a3   : > { %v820_v53 = vpop.xlane.xlu0 %819  ;;  %v971_v54 = vpop.permute.xlu1 %970 }
 0x5a7   : > { %v973_v55 = vpop.permute.xlu0 %972 }
 0x5a8   : > { %v978_v17 = vsel %vm623_vm4, %v973_v55, 0 }
 0x5d4   : > { %v690_v56 = vpop.xlane.xlu1 %689 }
 0x5d5   : > { %2302 = vrcp.f32 %v690_v56 }
 0x5d8   : > { %v693_v57 = vpop.xlane.xlu0 %692 }
 0x5d9   : > { %2304 = vrcp.f32 %v693_v57 }
 0x5da   : > { %2306 = vrcp.f32 %v817_v51 }
 0x5db   : > { %2308 = vrcp.f32 %v820_v53 }
 0x5df   : > { %v2303_v61 = vpop.eup %2302 }
 0x5e0   : > { %v735_v60 = vpop.f32.mrb[4].mxu0 }
 0x5e1   : > { %v2013_v62 = vpop.f32.mrb[5].mxu0  ;;  %v743_v4 = vmul.f32 %v2303_v61, %v735_v60  ;;  %v1096_v60 = vld [vmem:[%s3116_s3 + $0x8] sm:$0xf] }
 0x5e2   : > { %v738_v63 = vpop.f32.mrb[6].mxu0  ;;  %v1101_v61 = vsel %vm878_vm8, %v1096_v60, 0  ;;  %v1917_v60 = vld [vmem:[%s3106_s14 + $0x1] ss:$0 sm:$0xff] }
 0x5e3   : > { %v2305_v0 = vpop.eup %2304  ;;  %v2014_v1 = vpop.f32.mrb[7].mxu0 }
 0x5e4   : > { %v745_v5 = vmul.f32 %v2305_v0, %v738_v63  ;;  %v2307_v9 = vpop.eup %2306 }
 0x5e5   : > { %v2309_v11 = vpop.eup %2308 }
 0x5e6   : > { %v746_v7 = vpack.c.bf16 %v745_v5, %v743_v4 }
 0x5e8   : > { %2036 = vmatmul.mubr.msk.bf16.vlgmr.msra.gmra.mrb[12].mxu0 %vm623_vm4, %v746_v7 }
 0x5e9   : > { %2047 = vmatprep.mubr.msk.bf16.mxu0 %vm2666_vm2, %v2665_v18 }
 0x5ea   : > { %v862_v8 = vpop.f32.mrb[8].mxu0 }
 0x5eb   : > { %v2025_v10 = vpop.f32.mrb[9].mxu0  ;;  %v870_v13 = vmul.f32 %v2307_v9, %v862_v8 }
 0x5ec   : > { %v865_v12 = vpop.f32.mrb[10].mxu0 }
 0x5ed   : > { %v872_v14 = vmul.f32 %v2309_v11, %v865_v12  ;;  %v2026_v15 = vpop.f32.mrb[11].mxu0 }
 0x5ef   : > { %v873_v16 = vpack.c.bf16 %v872_v14, %v870_v13 }
 0x5f1   : > { %2030 = vmatmul.mubr.msk.bf16.vlgmr.msra.gmra.mrb[8].mxu1 %vm623_vm4, %v873_v16 }
 0x5f2   : > { %2040 = vmatpush3.bf16.xpose.msra.mxu1 %v978_v17  ;;  %2041 = vmatprep.mubr.msk.bf16.mxu1 %vm2666_vm2, %v2665_v18 }
 0x5f3   : > { %2051 = vmatprep.subr.bf16.mxu1 %v2665_v18 }
 0x5f9   : > { %2042 = vmatmul.mubr.msk.bf16.vlgmr.msra.gmra.mrb[12].mxu1 %vm623_vm4, %v971_v54 }
 0x5fa   : > { %2053 = vmatprep.mubr.msk.bf16.mxu1 %vm2666_vm2, %v2665_v18  ;;  %2052 = vmatpush3.bf16.msra.mxu1 %v1101_v61 }
 0x5fb   : > { %2063 = vmatprep.subr.bf16.mxu1 %v2665_v18 }
 0x6bb   : > { %v963_v19 = vpop.f32.mrb[12].mxu0 }
 0x6bc   : > { %v2037_v20 = vpop.f32.mrb[13].mxu0 }
 0x6bd   : > { %v966_v22 = vpop.f32.mrb[14].mxu0 }
 0x6be   : > { %v2038_v25 = vpop.f32.mrb[15].mxu0 }
 0x6c4   : > { %v916_v26 = vpop.f32.mrb[8].mxu1 }
 0x6c5   : > { %v3257_v27 = vadd.f32 %v963_v19, %v916_v26  ;;  %v2031_v28 = vpop.f32.mrb[9].mxu1 }
 0x6c6   : > { %v919_v29 = vpop.f32.mrb[10].mxu1 }
 0x6c7   : > { %v3259_v30 = vadd.f32 %v966_v22, %v919_v29  ;;  %v2032_v31 = vpop.f32.mrb[11].mxu1 }
 0x6cc   : > { %v1014_v32 = vpop.f32.mrb[12].mxu1 }
 0x6cd   : > { %v1021_v33 = vmul.f32 0.35355338, %v1014_v32  ;;  %v2043_v34 = vpop.f32.mrb[13].mxu1 }
 0x6ce   : > { %v1017_v35 = vpop.f32.mrb[14].mxu1 }
 0x6cf   : > { %v1022_v36 = vmul.f32 0.35355338, %v1017_v35  ;;  %v2044_v37 = vpop.f32.mrb[15].mxu1  ;;  %v1023_v38 = vsel %vm618_vm5, %v1021_v33, -1e+30 }
 0x6d0   : > { %v1025_v39 = vsel %vm675_vm6, %v1023_v38, -inf }
 0x6d1   : > { %1026 = vmax.xlane.f32.xlu0 %v1025_v39  ;;  %v1024_v40 = vsel %vm619_vm7, %v1022_v36, -1e+30 }
 0x6d2   : > { %v1028_v41 = vsel %vm675_vm6, %v1024_v40, -inf }
 0x6d3   : > { %1029 = vmax.xlane.f32.xlu1 %v1028_v41 }
 0x6e4   : > { %1148 = vrot.lane.b32.xlu1 %v3181_v52, %s2673_s15 }
 0x6e7   : > { %1044 = vrot.lane.b32.xlu0 %v3181_v52, %s2674_s20 }
 0x6e8   : > { %1146 = vrot.lane.b32.xlu1 %v3181_v52, %s2675_s12 }
 0x75e   : > { %v1027_v42 = vpop.xlane.xlu0 %1026 }
 0x75f   : > { %v1031_v43 = vsub.f32 %v1023_v38, %v1027_v42 }
 0x760   : > { %v1030_v44 = vpop.xlane.xlu1 %1029 }
 0x761   : > { %v1033_v45 = vmul.f32 1.442695, %v1031_v43  ;;  %v1032_v46 = vsub.f32 %v1024_v40, %v1030_v44  ;;  %v1272_v43 = vld [vmem:[%s3116_s3 + $0xc] sm:$0xf]  ;;  %s2677_s3 = smov 32  }
 0x762   : > { %v1045_v47 = vpop.permute.xlu0 %1044  ;;  %v1277_v44 = vsel %vm878_vm8, %v1272_v43, 0  ;;  %v2284_v43 = vld [vmem:[%s3123_s17 + $0x10] sm:$0xff]  }
 0x763   : > { %2310 = vpow2.f32 %v1033_v45  ;;  %v1035_v48 = vmul.f32 1.442695, %v1032_v46  ;;  %2046 = vmatpush3.bf16.msra.mxu0 %v1045_v47 }
 0x764   : > { %2057 = vmatprep.subr.bf16.mxu0 %v2665_v18  ;;  %v1149_v53 = vpop.permute.xlu1 %1148 }
 0x765   : > { %2312 = vpow2.f32 %v1035_v48  ;;  %v1154_v56 = vsel %vm623_vm4, %v1149_v53, 0 }
 0x768   : > { %v1147_v57 = vpop.permute.xlu1 %1146 }
 0x76d   : > { %v2311_v49 = vpop.eup %2310 }
 0x76e   : > { %v1037_v50 = vsel %vm675_vm6, %v2311_v49, 0.0 }
 0x76f   : > { %v2313_v51 = vpop.eup %2312  ;;  %1038 = vadd.xlane.f32.xlu1 %v1037_v50 }
 0x770   : > { %v1040_v54 = vsel %vm675_vm6, %v2313_v51, 0.0  ;;  %v1043_v55 = vpack.c.bf16 %v2313_v51, %v2311_v49 }
 0x771   : > { %1041 = vadd.xlane.f32.xlu0 %v1040_v54 }
 0x772   : > { %2048 = vmatmul.mubr.msk.bf16.vlgmr.msra.gmra.mrb[16].mxu0 %vm675_vm6, %v1043_v55 }
 0x773   : > { %2058 = vmatpush3.bf16.xpose.msra.mxu0 %v1154_v56  ;;  %2059 = vmatprep.mubr.msk.bf16.mxu0 %vm2666_vm2, %v2665_v18 }
 0x774   : > { %2069 = vmatprep.subr.bf16.mxu0 %v2665_v18 }
 0x77a   : > { %2060 = vmatmul.mubr.msk.bf16.vlgmr.msra.gmra.mrb[20].mxu0 %vm623_vm4, %v1147_v57 }
 0x77b   : > { %2071 = vmatprep.mubr.msk.bf16.mxu0 %vm2666_vm2, %v2665_v18  ;;  %2070 = vmatpush3.bf16.msra.mxu0 %v1277_v44  ;;  %v2285_v44 = vld [vmem:[%s3123_s17 + $0x18] sm:$0xff]  }
 0x77c   : > { %2083 = vmatprep.subr.bf16.mxu0 %v2665_v18 }
 0x780   : > { %1220 = vrot.lane.b32.xlu1 %v3181_v52, %s2676_s18 }
 0x7fc   : > { %v1039_v62 = vpop.xlane.xlu1 %1038 }
 0x7fd   : > { %2314 = vrcp.f32 %v1039_v62 }
 0x7fe   : > { %v1042_v63 = vpop.xlane.xlu0 %1041 }
 0x7ff   : > { %2316 = vrcp.f32 %v1042_v63 }
 0x800   : > { %v1221_v52 = vpop.permute.xlu1 %1220 }
 0x807   : > { %v2315_v1 = vpop.eup %2314 }
 0x809   : > { %v2317_v5 = vpop.eup %2316 }
 0x845   : > { %v1084_v0 = vpop.f32.mrb[16].mxu0 }
 0x846   : > { %v2049_v4 = vpop.f32.mrb[17].mxu0  ;;  %v1092_v8 = vmul.f32 %v2315_v1, %v1084_v0 }
 0x847   : > { %v1087_v7 = vpop.f32.mrb[18].mxu0 }
 0x848   : > { %v1094_v9 = vmul.f32 %v2317_v5, %v1087_v7  ;;  %v2050_v10 = vpop.f32.mrb[19].mxu0 }
 0x84a   : > { %v1095_v11 = vpack.c.bf16 %v1094_v9, %v1092_v8 }
 0x84c   : > { %2054 = vmatmul.mubr.msk.bf16.vlgmr.msra.gmra.mrb[16].mxu1 %vm623_vm4, %v1095_v11 }
 0x84d   : > { %2064 = vmatpush3.bf16.msra.mxu1 %v1221_v52  ;;  %v1190_v12 = vpop.f32.mrb[20].mxu0  ;;  %2065 = vmatprep.mubr.msk.bf16.mxu1 %vm2666_vm2, %v2665_v18 }
 0x84e   : > { %v1197_v13 = vmul.f32 0.35355338, %v1190_v12  ;;  %v2061_v14 = vpop.f32.mrb[21].mxu0  ;;  %2075 = vmatprep.subr.bf16.mxu1 %v2665_v18 }
 0x84f   : > { %v1193_v15 = vpop.f32.mrb[22].mxu0 }
 0x850   : > { %v1198_v16 = vmul.f32 0.35355338, %v1193_v15  ;;  %v2062_v17 = vpop.f32.mrb[23].mxu0  ;;  %v1199_v19 = vsel %vm618_vm5, %v1197_v13, -1e+30 }
 0x851   : > { %v1201_v20 = vsel %vm675_vm6, %v1199_v19, -inf }
 0x852   : > { %1202 = vmax.xlane.f32.xlu0 %v1201_v20  ;;  %v1200_v22 = vsel %vm619_vm7, %v1198_v16, -1e+30  ;;  %v2281_v20 = vld [vmem:[%s411_s24 + $0x8] sm:$0xff]  }
 0x853   : > { %v1204_v25 = vsel %vm675_vm6, %v1200_v22, -inf }
 0x856   : > { %1205 = vmax.xlane.f32.xlu0 %v1204_v25 }
 0x8df   : > { %v1203_v26 = vpop.xlane.xlu0 %1202 }
 0x8e0   : > { %v1207_v28 = vsub.f32 %v1199_v19, %v1203_v26  ;;  %v2280_v19 = vld [vmem:[%s411_s24] sm:$0xff]   ;;  %s1677_s24 = sshll.u32 %s3129_s1, 4  ;;  %s3390_s24 = int_to_ptr.vmem [resolvable:$true] %s1677_s24 }
 0x8e1   : > { %s2518_s9 = scalar_lea.vmem %s3390_s24, 256  ;;  %p2525_p10 = scmp.lt.s32.totalorder %s3390_s24, %s2523_s21 }
 0x8e2   : > { %v1209_v29 = vmul.f32 1.442695, %v1207_v28  ;;  %p2519_p0 = scmp.ne.s32.totalorder %s3390_s24, %s2518_s9  ;;  %p2526_p3 = scmp.lt.s32.totalorder %s2524_s23, %s2518_s9 }
 0x8e3   : > { %v1206_v31 = vpop.xlane.xlu0 %1205 }
 0x8e4   : > { %2318 = vpow2.f32 %v1209_v29  ;;  %v1208_v32 = vsub.f32 %v1200_v22, %v1206_v31  ;;  %v493_v22 = vld [vmem:[%s3106_s14 + $0x2] sm:$0x3]  ;;  %s3534_s14 = sld [smem:[#allocation23_spill]]  ;;  %p2520_p12 = pnand %p2519_p0, %p3536_p8 }
 0x8e5   : > { %v1385_v25 = vrot.slane %v493_v22, %v547_v24  ;;  %v1381_v26 = vrot.slane %v493_v22, %v543_v23  ;;  %p2527_p2 = por %p2526_p3, %p2525_p10 }
 0x8e6   : > { %v1211_v33 = vmul.f32 1.442695, %v1208_v32  ;;  %p2521_p5 = pneg %p2520_p12 }
 0x8e8   : > { %2320 = vpow2.f32 %v1211_v33  ;;  %p2528_p6 = pnand %p2527_p2, %p2521_p5 }
 0x8ea   : > { %s1943_s28 = sshll.u32 %s3534_s14, 8 }
 0x8ee   : > { %v2319_v34 = vpop.eup %2318 }
 0x8ef   : > { %v1213_v35 = vsel %vm675_vm6, %v2319_v34, 0.0 }
 0x8f0   : > { %1214 = vadd.xlane.f32.xlu0 %v1213_v35 }
 0x8f2   : > { %v2321_v36 = vpop.eup %2320 }
 0x8f3   : > { %v1216_v58 = vsel %vm675_vm6, %v2321_v36, 0.0  ;;  %v1219_v59 = vpack.c.bf16 %v2321_v36, %v2319_v34 }
 0x8f4   : > { %1217 = vadd.xlane.f32.xlu0 %v1216_v58 }
 0x8f5   : > { %2066 = vmatmul.mubr.msk.bf16.vlgmr.msra.gmra.mrb[20].mxu1 %vm675_vm6, %v1219_v59 }
 0x8f6   : > { %2079 = vmatprep.mubr.msk.bf16.mxu1 %vm2666_vm2, %v2665_v18  ;;  %2076 = vmatpush3.bf16.msra.mxu1 %v2280_v19 }
 0x8f7   : > { %2077 = vmatprep.subr.bf16.mxu1 %v2665_v18 }
 0x8fa   : > { %2078 = vmatpush3.bf16.msra.mxu1 %v2281_v20 }
 0x8fb   : > { %2103 = vmatprep.subr.bf16.mxu1 %v2665_v18 }
 0x91f   : > { %v1137_v37 = vpop.f32.mrb[16].mxu1 }
 0x920   : > { %v1144_v38 = vadd.f32 %v1137_v37, %v3257_v27  ;;  %v2055_v39 = vpop.f32.mrb[17].mxu1 }
 0x921   : > { %v1140_v40 = vpop.f32.mrb[18].mxu1 }
 0x922   : > { %v1145_v41 = vadd.f32 %v1140_v40, %v3259_v30  ;;  %v2056_v42 = vpop.f32.mrb[19].mxu1 }
 0x923   : > { %v2283_v42 = vld [vmem:[%s3123_s17 + $0x8] sm:$0xff]  }
 0x97d   : > { %v1215_v45 = vpop.xlane.xlu0 %1214 }
 0x97e   : > { %2322 = vrcp.f32 %v1215_v45  ;;  %v2286_v45 = vld [vmem:[%s3123_s17 + $0x20] sm:$0xff]  }
 0x981   : > { %v1218_v46 = vpop.xlane.xlu0 %1217 }
 0x982   : > { %2324 = vrcp.f32 %v1218_v46  ;;  %v2287_v46 = vld [vmem:[%s3123_s17 + $0x28] sm:$0xff]  }
 0x988   : > { %v2323_v48 = vpop.eup %2322 }
 0x98c   : > { %v2325_v27 = vpop.eup %2324 }
 0x9c8   : > { %v1260_v47 = vpop.f32.mrb[20].mxu1 }
 0x9c9   : > { %v2067_v49 = vpop.f32.mrb[21].mxu1  ;;  %v1268_v51 = vmul.f32 %v2323_v48, %v1260_v47  ;;  %v2288_v47 = vld [vmem:[%s3123_s17 + $0x30] sm:$0xff]   ;;  %v2289_v48 = vld [vmem:[%s3123_s17 + $0x38] sm:$0xff]  }
 0x9ca   : > { %v1263_v50 = vpop.f32.mrb[22].mxu1 }
 0x9cb   : > { %v1270_v30 = vmul.f32 %v2325_v27, %v1263_v50  ;;  %v2068_v53 = vpop.f32.mrb[23].mxu1 }
 0x9cd   : > { %v1271_v54 = vpack.c.bf16 %v1270_v30, %v1268_v51 }
 0x9cf   : > { %2072 = vmatmul.mubr.msk.bf16.vlgmr.msra.gmra.mrb[24].mxu0 %vm623_vm4, %v1271_v54 }
 0x9d0   : > { %2099 = vmatprep.mubr.msk.bf16.mxu0 %vm2666_vm2, %v2665_v18 }
 0xaa2   : > { %v1313_v55 = vpop.f32.mrb[24].mxu0 }
 0xaa3   : > { %v1320_v56 = vadd.f32 %v1313_v55, %v1144_v38  ;;  %v2073_v57 = vpop.f32.mrb[25].mxu0 }
 0xaa4   : > { %v1316_v61 = vpop.f32.mrb[26].mxu0 }
 0xaa5   : > { %v1322_v62 = vadd.f32 %v1320_v56, %v3135_v2  ;;  %v1321_v63 = vadd.f32 %v1316_v61, %v1145_v41  ;;  %v2074_v0 = vpop.f32.mrb[27].mxu0  ;;  %v2282_v41 = vld [vmem:[%s3123_s17] sm:$0xff]  }
 0xaa6   : > { %2084 = vmatpush3.bf16.msra.mxu0 %v2282_v41 }
 0xaa7   : > { %v1330_v1 = vadd.f32 %v1917_v60, %v1322_v62  ;;  %v1323_v4 = vadd.f32 %v1321_v63, %v3138_v3  ;;  %2085 = vmatprep.subr.bf16.mxu0 %v2665_v18 }
 0xaa9   : > { %1332 = vst.msk [vmem:[%s3129_s1] sm:$0xff] %vm498_vm1, %v1330_v1  ;;  %v1331_v5 = vadd.f32 %v1917_v60, %v1323_v4 }
 0xaaa   : > { %2086 = vmatpush3.bf16.msra.mxu0 %v2283_v42 }
 0xaab   : > { %1333 = vst.msk [vmem:[%s3129_s1 + $0x8] sm:$0xff] %vm498_vm1, %v1331_v5  ;;  %2087 = vmatprep.subr.bf16.mxu0 %v2665_v18 }
 0xaae   : > { %2088 = vmatpush3.bf16.msra.mxu0 %v2284_v43 }
 0xaaf   : > { %2089 = vmatprep.subr.bf16.mxu0 %v2665_v18 }
 0xab0   : > { %v3320_v7 = vld [vmem:[%s3129_s1] sm:$0xff] }
 0xab1   : > { %v1355_v8 = vsel %vm498_vm1, %v3320_v7, 0.0 }
 0xab2   : > { %1356 = vadd.xlane.f32.xlu0 %v1355_v8  ;;  %v3325_v9 = vld [vmem:[%s3129_s1 + $0x8] sm:$0xff]  ;;  %2090 = vmatpush3.bf16.msra.mxu0 %v2285_v44 }
 0xab3   : > { %v1552_v2 = vsel %vm498_vm1, %v3325_v9, 0.0  ;;  %2091 = vmatprep.subr.bf16.mxu0 %v2665_v18 }
 0xab6   : > { %1553 = vadd.xlane.f32.xlu0 %v1552_v2  ;;  %2092 = vmatpush3.bf16.msra.mxu0 %v2286_v45 }
 0xab7   : > { %2093 = vmatprep.subr.bf16.mxu0 %v2665_v18 }
 0xaba   : > { %2094 = vmatpush3.bf16.msra.mxu0 %v2287_v46 }
 0xabb   : > { %2095 = vmatprep.subr.bf16.mxu0 %v2665_v18 }
 0xabe   : > { %2096 = vmatpush3.bf16.msra.mxu0 %v2288_v47 }
 0xabf   : > { %2097 = vmatprep.subr.bf16.mxu0 %v2665_v18 }
 0xac2   : > { %2098 = vmatpush3.bf16.msra.mxu0 %v2289_v48 }
 0xacc   : > { %1368 = vrot.lane.b32.xlu0 %v3145_v6, %s2667_s11  ;;  %s1664_s11 = scalar_lea.sflag [#allocation4], %s3096_s8 }
 0xb3f   : > { %v1357_v3 = vpop.xlane.xlu0 %1356 }
 0xb40   : > { %v1358_v10 = vmul.f32 0.03125, %v1357_v3 }
 0xb42   : > { %v1359_v11 = vsub.f32 %v3320_v7, %v1358_v10 }
 0xb43   : > { %v1554_v52 = vpop.xlane.xlu0 %1553 }
 0xb44   : > { %v1555_v12 = vmul.f32 0.03125, %v1554_v52  ;;  %v1360_v13 = vmul.f32 %v1359_v11, %v1359_v11 }
 0xb46   : > { %v1556_v14 = vsub.f32 %v3325_v9, %v1555_v12  ;;  %v1361_v15 = vsel %vm498_vm1, %v1360_v13, 0.0 }
 0xb47   : > { %1362 = vadd.xlane.f32.xlu1 %v1361_v15  ;;  %v1369_v28 = vpop.permute.xlu0 %1368 }
 0xb48   : > { %v1557_v16 = vmul.f32 %v1556_v14, %v1556_v14 }
 0xb4a   : > { %v1558_v17 = vsel %vm498_vm1, %v1557_v16, 0.0 }
 0xb4b   : > { %1559 = vadd.xlane.f32.xlu0 %v1558_v17 }
 0xb58   : > { %1400 = vrot.lane.b32.xlu1 %v1385_v25, %s2664_s6 }
 0xb61   : > { %1372 = vrot.lane.b32.xlu0 %v3145_v6, %s2677_s3 }
 0xb65   : > { %1398 = vrot.lane.b32.xlu0 %v1381_v26, %s2664_s6 }
 0xb69   : > { %1506 = vrot.lane.b32.xlu0 %v1917_v60, %s2664_s6  ;;  %s3388_s6 = scalar_lea.hbm %s3535_s16, %s1943_s28 }
 0xbd4   : > { %v1363_v6 = vpop.xlane.xlu1 %1362 }
 0xbd5   : > { %v1364_v29 = vmul.f32 0.03125, %v1363_v6 }
 0xbd7   : > { %v1365_v31 = vadd.f32 1e-05, %v1364_v29 }
 0xbd8   : > { %v1560_v32 = vpop.xlane.xlu0 %1559  ;;  %v1401_v49 = vpop.permute.xlu1 %1400 }
 0xbd9   : > { %2326 = vrsqrt.f32 %v1365_v31  ;;  %v1561_v33 = vmul.f32 0.03125, %v1560_v32 }
 0xbdb   : > { %v1562_v34 = vadd.f32 1e-05, %v1561_v33 }
 0xbdc   : > { %v1373_v36 = vpop.permute.xlu0 %1372 }
 0xbdd   : > { %2328 = vrsqrt.f32 %v1562_v34 }
 0xbe0   : > { %v1399_v27 = vpop.permute.xlu0 %1398 }
 0xbe1   : > { %v1403_v50 = vsel %vm1402_vm9, %v1399_v27, %v1401_v49 }
 0xbe3   : > { %v2327_v35 = vpop.eup %2326 }
 0xbe4   : > { %v1367_v24 = vmul.f32 %v2327_v35, %v1359_v11  ;;  %v1507_v16 = vpop.permute.xlu0 %1506 }
 0xbe6   : > { %v1371_v21 = vmul.f32 %v1369_v28, %v1367_v24 }
 0xbe7   : > { %v2329_v23 = vpop.eup %2328 }
 0xbe8   : > { %v1564_v58 = vmul.f32 %v2329_v23, %v1556_v14  ;;  %v1375_v59 = vadd.f32 %v1373_v36, %v1371_v21 }
 0xbea   : > { %v1565_v37 = vmul.f32 %v1564_v58, %v1369_v28  ;;  %v1376_v38 = vpack.c.bf16 %v1375_v59, %v1375_v59 }
 0xbec   : > { %2080 = vmatmul.mubr.msk.bf16.vlgmr.msra.gmra.mrb[24].mxu1 %vm498_vm1, %v1376_v38  ;;  %v1566_v39 = vadd.f32 %v1565_v37, %v1373_v36 }
 0xbed   : > { %2104 = vmatpush3.bf16.msra.mxu1 %v2280_v19  ;;  %2107 = vmatprep.mubr.msk.bf16.mxu1 %vm2666_vm2, %v2665_v18 }
 0xbee   : > { %2105 = vmatprep.subr.bf16.mxu1 %v2665_v18  ;;  %v1567_v40 = vpack.c.bf16 %v1566_v39, %v1566_v39 }
 0xbf1   : > { %2106 = vmatpush3.bf16.msra.mxu1 %v2281_v20 }
 0xbf2   : > { %2111 = vmatprep.subr.bf16.mxu1 %v2665_v18 }
 0xbf4   : > { %2108 = vmatmul.mubr.msk.bf16.vlgmr.msra.gmra.mrb[28].mxu1 %vm498_vm1, %v1567_v40 }
 0xbf5   : > { %2127 = vmatprep.mubr.msk.bf16.mxu1 %vm2666_vm2, %v2665_v18  ;;  %2112 = vmatpush3.bf16.msra.mxu1 %v2282_v41 }
 0xbf6   : > { %2113 = vmatprep.subr.bf16.mxu1 %v2665_v18 }
 0xbf9   : > { %2114 = vmatpush3.bf16.msra.mxu1 %v2283_v42 }
 0xbfa   : > { %2115 = vmatprep.subr.bf16.mxu1 %v2665_v18 }
 0xbfd   : > { %2116 = vmatpush3.bf16.msra.mxu1 %v2284_v43 }
 0xbfe   : > { %2117 = vmatprep.subr.bf16.mxu1 %v2665_v18 }
 0xc01   : > { %2118 = vmatpush3.bf16.msra.mxu1 %v2285_v44 }
 0xc02   : > { %2119 = vmatprep.subr.bf16.mxu1 %v2665_v18 }
 0xc05   : > { %2120 = vmatpush3.bf16.msra.mxu1 %v2286_v45 }
 0xc06   : > { %2121 = vmatprep.subr.bf16.mxu1 %v2665_v18 }
 0xc09   : > { %2122 = vmatpush3.bf16.msra.mxu1 %v2287_v46 }
 0xc0a   : > { %2123 = vmatprep.subr.bf16.mxu1 %v2665_v18 }
 0xc0d   : > { %2124 = vmatpush3.bf16.msra.mxu1 %v2288_v47 }
 0xc0e   : > { %2125 = vmatprep.subr.bf16.mxu1 %v2665_v18 }
 0xc11   : > { %2126 = vmatpush3.bf16.msra.mxu1 %v2289_v48 }
 0xcbf   : > { %v1442_v51 = vpop.f32.mrb[24].mxu1 }
 0xcc0   : > { %v1443_v30 = vadd.f32 %v1442_v51, %v1403_v50  ;;  %v2081_v53 = vpop.f32.mrb[25].mxu1 }
 0xcc1   : > { %v1445_v54 = vpop.f32.mrb[26].mxu1 }
 0xcc2   : > { %v1448_v55 = vpack.c.bf16 %v1443_v30, %v1443_v30  ;;  %v2082_v56 = vpop.f32.mrb[27].mxu1 }
 0xcc4   : > { %v1921_v57 = vmul.bf16 3218784218, %v1448_v55 }
 0xcc6   : > { %v1452_v60 = vmul.bf16 1069105081, %v1921_v57 }
 0xcc7   : > { %v1605_v61 = vpop.f32.mrb[28].mxu1 }
 0xcc8   : > { %2330 = vpow.bf16 %v1452_v60  ;;  %v1606_v62 = vadd.f32 %v1605_v61, %v1403_v50  ;;  %v2109_v63 = vpop.f32.mrb[29].mxu1 }
 0xcc9   : > { %v1608_v18 = vpop.f32.mrb[30].mxu1 }
 0xcca   : > { %v1611_v0 = vpack.c.bf16 %v1606_v62, %v1606_v62  ;;  %v2110_v1 = vpop.f32.mrb[31].mxu1 }
 0xccc   : > { %v1931_v4 = vmul.bf16 3218784218, %v1611_v0 }
 0xcce   : > { %v1615_v5 = vmul.bf16 1069105081, %v1931_v4 }
 0xcd0   : > { %2332 = vpow.bf16 %v1615_v5 }
 0xcd3   : > { %v2331_v8 = vpop.eup %2330 }
 0xcd4   : > { %v1454_v2 = vadd.bf16 1065369472, %v2331_v8 }
 0xcd6   : > { %2334 = vrcp.bf16 %v1454_v2 }
 0xcdb   : > { %v2333_v3 = vpop.eup %2332 }
 0xcdc   : > { %v1617_v10 = vadd.bf16 1065369472, %v2333_v3 }
 0xcde   : > { %2336 = vrcp.bf16 %v1617_v10 }
 0xce1   : > { %v2335_v11 = vpop.eup %2334 }
 0xce2   : > { %v1456_v52 = vmul.bf16 1065369472, %v2335_v11 }
 0xce4   : > { %v1457_v12 = vmul.bf16 %v1456_v52, %v1448_v55 }
 0xce6   : > { %2100 = vmatmul.mubr.bf16.vlgmr.msra.gmra.mrb[28].mxu0 %v1457_v12 }
 0xce9   : > { %v2337_v13 = vpop.eup %2336 }
 0xcea   : > { %v1619_v14 = vmul.bf16 1065369472, %v2337_v13 }
 0xcec   : > { %v1620_v15 = vmul.bf16 %v1619_v14, %v1611_v0 }
 0xcee   : > { %2128 = vmatmul.mubr.bf16.vlgmr.msra.gmra.mrb[32].mxu1 %v1620_v15 }
 0xdb9   : > { %v1543_v17 = vpop.f32.mrb[28].mxu0 }
 0xdba   : > { %v1544_v19 = vadd.f32 %v1543_v17, %v1507_v16  ;;  %v2101_v20 = vpop.f32.mrb[29].mxu0 }
 0xdbb   : > { %v1546_v22 = vpop.f32.mrb[30].mxu0 }
 0xdbc   : > { %v1549_v25 = vadd.f32 %v1544_v19, %v3320_v7  ;;  %v2102_v26 = vpop.f32.mrb[31].mxu0 }
 0xdbe   : > { %1550 = vst.msk [vmem:[%s3129_s1] sm:$0xff] %vm498_vm1, %v1549_v25 }
 0xdc1   : > { %v1655_v28 = vpop.f32.mrb[32].mxu1 }
 0xdc2   : > { %v1656_v6 = vadd.f32 %v1655_v28, %v1507_v16  ;;  %v2129_v29 = vpop.f32.mrb[33].mxu1 }
 0xdc3   : > { %v1658_v31 = vpop.f32.mrb[34].mxu1 }
 0xdc4   : > { %v1661_v7 = vadd.f32 %v1656_v6, %v3325_v9  ;;  %v2130_v32 = vpop.f32.mrb[35].mxu1 }
 0xdc6   : > { %1662 = vst.msk [vmem:[%s3129_s1 + $0x8] sm:$0xff] %vm498_vm1, %v1661_v7 }
 0xdc7   : > { %2531 = shalt.err (!%p2528_p6)
}
 0xdc8   : > { %s2532_s1 = scalar_lea.hbm %s3388_s6, 256  ;;  %s2536_s20 = scalar_lea.hbm %s3535_s16, 512 }
 0xdc9   : > { %p2533_p11 = scmp.ne.s32.totalorder %s3388_s6, %s2532_s1  ;;  %p2537_p1 = scmp.lt.u32.totalorder %s3388_s6, %s3535_s16 }
 0xdca   : > { %p2538_p7 = scmp.lt.u32.totalorder %s2536_s20, %s2532_s1  ;;  %p2540_p0 = scmp.lt.u32.totalorder %s2532_s1, %s3388_s6 }
 0xdcb   : > { %p2534_p4 = pnand %p2533_p11, %p3536_p8 }
 0xdcc   : > { %p2539_p9 = por %p2538_p7, %p2537_p1 }
 0xdcd   : > { %p2535_p13 = pneg %p2534_p4 }
 0xdce   : > { %p2541_p12 = por %p2540_p0, %p2539_p9 }
 0xdd0   : > { %p2542_p5 = pnand %p2541_p12, %p2535_p13 }
 0xdd2   : > { %2545 = shalt.err (!%p2542_p5)
}
 0xdd3   : > { %s2679_s3 = smov 128   ;;  %s2680_s14 = smov 8  }
 0xdd4   : > { %2143 = dma.vmem_to_hbm [thread:$0]  (%p3536_p8), %s3390_s24, 256, %s3388_s6, %s1664_s11, %s2679_s3, %s2679_s3, %s2680_s14  }
 0xdd5 PF: > { %s3537_s28 = sld [smem:[#allocation21_spill]]  ;;  %p2169_p10 = scmp.ge.s32.totalorder %s2652_s7, 2 }
 0xdd6   : > { %p3538_p3 = scmp.ne.s32.totalorder %s3519_s22, 0 }
 0xdd8   : > { %p2165_p2 = pnand %p2169_p10, %p3538_p3 }
 0xddb   : > { %s1692_s0 = sand.u32 1, %s3537_s28  }
 0xddc   : > { %s1693_s17 = scalar_lea.sflag [#allocation4], %s1692_s0 }
 0xddd   : > { %2607 = dma.done.wait (!%p2165_p2), %s1693_s17, 256  }
 0xdde   : > { %2609 = vsyncadd (!%p2165_p2), %s1693_s17, 4294967040  ;;  %s31_s7 = sadd.s32 1, %s2652_s7   ;;  %s3539_s21 = sld [smem:[#allocation19_spill]] }
 0xddf   : > { %p28_p6 = scmp.ge.s32.totalorder %s31_s7, 6   ;;  %s3540_s22 = sld [smem:[#allocation20_spill]] }
 0xde0   : > { %s3541_s23 = sld [smem:[#allocation27_spill]]  ;;  %s3542_s10 = sld [smem:[#allocation25_spill]] }
 0xde1   : > { %s3543_s8 = sld [smem:[#allocation29_spill]]  ;;  %s3544_s24 = smov %s2628_s25 }
 0xde2   : > { %s3545_s25 = smov %s2632_s26  ;;  %s3546_s26 = smov %s2943_s13 }
 0xde3   : > { %s3547_s27 = smov %s2644_s29  ;;  %s3548_s28 = smov %s2648_s30 }
 0xde4   :  { %30 = sbr.rel (!%p28_p6) target bundleno = 20 (0x14), region = 154 }
 0xde6   : > { %s3549_s29 = smov %s3542_s10 }
 0xde7   : > { %s3550_s30 = smov %s3543_s8 }
 0xdeb   :  { %1698 = vsyncpa [#allocation3], 1 }
 0xdec   :  { %1700 = vsyncpa [#allocation3 + $0x1], 1 }
 0xded   :  { %1701 = vsyncpa [#allocation6], 1 }
 0xdee   :  { %1703 = vsyncpa [#allocation6 + $0x1], 1 }
 0xdef   :  { %1704 = vsyncpa [#allocation9], 1 }
 0xdf0   :  { %1706 = vsyncpa [#allocation9 + $0x1], 1 }
 0xdf1   :  { %1707 = vsyncpa [#allocation12], 1 }
 0xdf2   :  { %1709 = vsyncpa [#allocation12 + $0x1], 1 }
 0xdf3   :  { %1710 = vsyncpa [#allocation4], 1 }
 0xdf4   :  { %1712 = vsyncpa [#allocation4 + $0x1], 1 }

</bundles_post_ra>
